<compile_context>
chip_gen: v6e
topology: v6e:2x2x1
jax: 0.10.0
libtpu: 0.0.40
codegen_flags: <defaults>
</compile_context>

<pallas_src>
import math
import functools

import jax
import jax.numpy as jnp
from jax import lax
from jax.experimental import pallas as pl
from jax.experimental.pallas import tpu as pltpu


COMPUTE_DTYPE = jnp.float32   # flip to jnp.bfloat16 on v6e/v7x (weights then stored bf16 at rest)


# ------------------------------ fused multi-layer kernel ------------------------------


def _encoder_stack_kernel(x_ref, pe_ref, wqkv_ref, bqkv_ref, wo_ref, w1_ref, b1_ref,
                          w2_ref, vecs_ref, o_ref, x_sc, *, nhead, eps, compute_dtype):
    l = pl.program_id(1)                      # layer index (innermost, "arbitrary")
    S, D = x_sc.shape
    dh = D // nhead

    def cast(a):
        return a if a.dtype == compute_dtype else a.astype(compute_dtype)

    @pl.when(l == 0)
    def _():
        # PositionalEncoding folded into layer 0 (pe already sliced to (S, D)).
        # TODO(synk): dropout (p=0.1) in PositionalEncoding / encoder layers omitted (eval).
        x_sc[...] = x_ref[0] + pe_ref[...]

    x = x_sc[...]                             # (S, D) f32 activation carried across layers

    wqkv = wqkv_ref[0]                        # (D, 3D)  compute_dtype (stored at rest)
    bqkv = bqkv_ref[0]                        # (1, 3D)  f32
    wo_h = wo_ref[0]                          # (nhead, dh, D) compute_dtype
    w1 = w1_ref[0]                            # (D, FF)  compute_dtype
    b1 = b1_ref[0]                            # (1, FF)  f32
    w2 = w2_ref[0]                            # (FF, D)  compute_dtype
    vecs = vecs_ref[0]                        # (8, D)   f32: [bo, ln1_g, ln1_b, b2, ln2_g, ln2_b, 0, 0]
    bo, ln1_g, ln1_b = vecs[0:1, :], vecs[1:2, :], vecs[2:3, :]
    b2, ln2_g, ln2_b = vecs[3:4, :], vecs[4:5, :], vecs[5:6, :]

    # ---- packed QKV projection (1/sqrt(dh) pre-folded into the Q columns at init) ----
    qkv = jnp.dot(cast(x), cast(wqkv), preferred_element_type=jnp.float32) + bqkv   # (S, 3D)

    # ---- batched multi-head self-attention: one batched dot for scores, one for context ----
    qh = jnp.stack([qkv[:, h * dh:(h + 1) * dh] for h in range(nhead)], axis=0)          # (H,S,dh)
    kh = jnp.stack([qkv[:, D + h * dh:D + (h + 1) * dh] for h in range(nhead)], axis=0)
    vh = jnp.stack([qkv[:, 2 * D + h * dh:2 * D + (h + 1) * dh] for h in range(nhead)], axis=0)

    s = jnp.einsum('hqd,hkd->hqk', cast(qh), cast(kh),
                   preferred_element_type=jnp.float32)                                    # (H,S,S)
    s = s - jnp.max(s, axis=-1, keepdims=True)
    p = jnp.exp(s)
    denom = jnp.sum(p, axis=-1, keepdims=True)
    r = pl.reciprocal(denom, approx=True)
    r = r * (2.0 - denom * r)                 # one Newton step -> near-exact softmax divide
    p = p * r
    ctx = jnp.einsum('hqk,hkd->hqd', cast(p), cast(vh),
                     preferred_element_type=jnp.float32)                                  # (H,S,dh)

    # ---- head merge fused into the output projection (no concat, no scratch):
    #      concat_h(ctx_h) @ wo  ==  sum_h ctx_h @ wo[h*dh:(h+1)*dh, :]  ----
    proj = jnp.einsum('hqd,hdn->hqn', cast(ctx), cast(wo_h),
                      preferred_element_type=jnp.float32)                                 # (H,S,D)
    attn_out = jnp.sum(proj, axis=0) + bo                                                 # (S, D)

    # ---- residual + post-LayerNorm 1 ----
    z = x + attn_out
    mu = jnp.mean(z, axis=-1, keepdims=True)
    zc = z - mu
    var = jnp.mean(zc * zc, axis=-1, keepdims=True)
    x1 = zc * lax.rsqrt(var + eps) * ln1_g + ln1_b

    # ---- feed forward (linear -> relu -> linear) + residual + post-LayerNorm 2 ----
    h1 = jnp.dot(cast(x1), cast(w1), preferred_element_type=jnp.float32) + b1
    h1 = jnp.maximum(h1, 0.0)
    ff = jnp.dot(cast(h1), cast(w2), preferred_element_type=jnp.float32) + b2
    z2 = x1 + ff
    mu2 = jnp.mean(z2, axis=-1, keepdims=True)
    zc2 = z2 - mu2
    var2 = jnp.mean(zc2 * zc2, axis=-1, keepdims=True)
    y = zc2 * lax.rsqrt(var2 + eps) * ln2_g + ln2_b

    x_sc[...] = y                             # carry activation to the next layer

    @pl.when(l == pl.num_programs(1) - 1)
    def _():
        o_ref[0] = y.astype(o_ref.dtype)      # single HBM writeback per batch row


# ------------------------------------- wrapper ----------------------------------------


def encoder_transformer_forward(x, params, pe, nhead,
                                compute_dtype=COMPUTE_DTYPE, eps=1e-5):
    """x: (B, S, D), pe: (max_len, D) with S <= max_len (reference requires S == max_len)."""
    B, S, D = x.shape
    L = params["wqkv"].shape[0]
    FF = params["w1"].shape[2]
    dh = D // nhead
    pe_s = pe[:S]                             # slice PE to the actual sequence length

    kernel = functools.partial(_encoder_stack_kernel, nhead=nhead, eps=eps,
                               compute_dtype=compute_dtype)

    in_specs = [
        pl.BlockSpec((1, S, D), lambda b, l: (b, 0, 0)),           # x: one batch row, resident over l
        pl.BlockSpec((S, D), lambda b, l: (0, 0)),                 # pe: fetched once, layer 0 only reads it
        pl.BlockSpec((1, D, 3 * D), lambda b, l: (l, 0, 0)),       # wqkv  (layer-indexed -> prefetched)
        pl.BlockSpec((1, 1, 3 * D), lambda b, l: (l, 0, 0)),       # bqkv
        pl.BlockSpec((1, nhead, dh, D), lambda b, l: (l, 0, 0, 0)),  # wo as (nhead, dh, D)
        pl.BlockSpec((1, D, FF), lambda b, l: (l, 0, 0)),          # w1
        pl.BlockSpec((1, 1, FF), lambda b, l: (l, 0, 0)),          # b1
        pl.BlockSpec((1, FF, D), lambda b, l: (l, 0, 0)),          # w2
        pl.BlockSpec((1, 8, D), lambda b, l: (l, 0, 0)),           # packed [bo, ln1_g, ln1_b, b2, ln2_g, ln2_b]
    ]
    grid_spec = pltpu.PrefetchScalarGridSpec(
        num_scalar_prefetch=0,
        grid=(B, L),                                               # B parallel (both v7x TCs), L arbitrary
        in_specs=in_specs,
        out_specs=pl.BlockSpec((1, S, D), lambda b, l: (b, 0, 0)),
        scratch_shapes=[pltpu.VMEM((S, D), jnp.float32)],          # cross-layer activation carry
    )
    return pl.pallas_call(
        kernel,
        out_shape=jax.ShapeDtypeStruct((B, S, D), jnp.float32),
        grid_spec=grid_spec,
        compiler_params=pltpu.CompilerParams(
            dimension_semantics=("parallel", "arbitrary"),
            vmem_limit_bytes=32 * 1024 * 1024),
    )(x, pe_s, params["wqkv"], params["bqkv"], params["wo"],
      params["w1"], params["b1"], params["w2"], params["vecs"])


# -------------------------------- params / PE init ------------------------------------


def make_positional_encoding(max_len, d_model):
    position = jnp.arange(max_len, dtype=jnp.float32)[:, None]
    div_term = jnp.exp(jnp.arange(0, d_model, 2, dtype=jnp.float32)
                       * (-math.log(10000.0) / d_model))
    pe = jnp.zeros((max_len, d_model), jnp.float32)
    pe = pe.at[:, 0::2].set(jnp.sin(position * div_term))
    pe = pe.at[:, 1::2].set(jnp.cos(position * div_term))
    return pe                                  # (max_len, d_model)


def init_params(key, d_model, nhead, num_layers, dim_feedforward,
                param_dtype=COMPUTE_DTYPE):
    """Weights stacked along a leading layer axis, pre-transposed to (K, N), matmul weights
    stored in `param_dtype` at rest (bf16 when COMPUTE_DTYPE=bf16), 1/sqrt(dh) folded into Q."""
    D, FF, L = d_model, dim_feedforward, num_layers
    dh = D // nhead
    qscale = 1.0 / math.sqrt(dh)
    s = 0.02
    wqkv_l, bqkv_l, wo_l, w1_l, b1_l, w2_l, vecs_l = [], [], [], [], [], [], []
    for _ in range(L):
        key, *ks = jax.random.split(key, 10)
        wqkv = s * jax.random.normal(ks[0], (D, 3 * D), jnp.float32)
        bqkv = s * jax.random.normal(ks[1], (3 * D,), jnp.float32)
        wqkv = wqkv.at[:, :D].multiply(qscale)       # fold 1/sqrt(dh) into Q columns
        bqkv = bqkv.at[:D].multiply(qscale)
        wo = s * jax.random.normal(ks[2], (D, D), jnp.float32)
        bo = s * jax.random.normal(ks[3], (D,), jnp.float32)
        w1 = s * jax.random.normal(ks[4], (D, FF), jnp.float32)
        b1 = s * jax.random.normal(ks[5], (FF,), jnp.float32)
        w2 = s * jax.random.normal(ks[6], (FF, D), jnp.float32)
        b2 = s * jax.random.normal(ks[7], (D,), jnp.float32)
        ln1_g = jnp.ones((D,), jnp.float32); ln1_b = jnp.zeros((D,), jnp.float32)
        ln2_g = jnp.ones((D,), jnp.float32); ln2_b = jnp.zeros((D,), jnp.float32)
        vecs = jnp.zeros((8, D), jnp.float32)
        vecs = vecs.at[0].set(bo).at[1].set(ln1_g).at[2].set(ln1_b)
        vecs = vecs.at[3].set(b2).at[4].set(ln2_g).at[5].set(ln2_b)
        wqkv_l.append(wqkv.astype(param_dtype))
        bqkv_l.append(bqkv.reshape(1, 3 * D))
        wo_l.append(wo.reshape(nhead, dh, D).astype(param_dtype))   # head-major for fused merge
        w1_l.append(w1.astype(param_dtype))
        b1_l.append(b1.reshape(1, FF))
        w2_l.append(w2.astype(param_dtype))
        vecs_l.append(vecs)
    return {"wqkv": jnp.stack(wqkv_l), "bqkv": jnp.stack(bqkv_l), "wo": jnp.stack(wo_l),
            "w1": jnp.stack(w1_l), "b1": jnp.stack(b1_l), "w2": jnp.stack(w2_l),
            "vecs": jnp.stack(vecs_l)}


# ----------------------------------------- main ----------------------------------------


if __name__ == "__main__":
    B, S, D = 2, 8, 32
    NHEAD = 4
    NUM_LAYERS = 2
    MAX_LEN = S          # reference `x + pe` broadcast requires S == max_len
    DIM_FF = 2048        # PyTorch TransformerEncoderLayer default dim_feedforward

    key = jax.random.PRNGKey(0)
    kp, kx = jax.random.split(key)

    params = init_params(kp, D, NHEAD, NUM_LAYERS, DIM_FF)
    pe = make_positional_encoding(MAX_LEN, D)
    x = jax.random.normal(kx, (B, S, D), jnp.float32)

    fwd = jax.jit(functools.partial(encoder_transformer_forward, nhead=NHEAD))
    out = fwd(x, params, pe)
    jax.block_until_ready(out)
    assert out.shape == (B, S, D)
    print("KERNEL_OK")
</pallas_src>

<mosaic_0001>
module attributes {stable_mosaic.version = 11 : i64} {
  func.func @_encoder_stack_kernel(%arg0: i32, %arg1: i32, %arg2: memref<1x8x32xf32, #tpu.memory_space<vmem>>, %arg3: memref<8x32xf32, #tpu.memory_space<vmem>>, %arg4: memref<1x32x96xf32, #tpu.memory_space<vmem>>, %arg5: memref<1x1x96xf32, #tpu.memory_space<vmem>>, %arg6: memref<1x4x8x32xf32, #tpu.memory_space<vmem>>, %arg7: memref<1x32x2048xf32, #tpu.memory_space<vmem>>, %arg8: memref<1x1x2048xf32, #tpu.memory_space<vmem>>, %arg9: memref<1x2048x32xf32, #tpu.memory_space<vmem>>, %arg10: memref<1x8x32xf32, #tpu.memory_space<vmem>>, %arg11: memref<1x8x32xf32, #tpu.memory_space<vmem>>, %arg12: memref<8x32xf32, #tpu.memory_space<vmem>>) attributes {dimension_semantics = [#tpu.dimension_semantics<parallel>, #tpu.dimension_semantics<arbitrary>], iteration_bounds = array<i64: 2, 2>, scalar_prefetch = 0 : i64, scratch_operands = 1 : i64, tpu.core_type = #tpu.core_type<tc>, window_params = [{transform_indices = @transform_0, window_bounds = array<i64: 1, 8, 32>}, {pipeline_mode = #tpu.pipeline_mode<synchronous>, transform_indices = @transform_1, window_bounds = array<i64: 8, 32>}, {transform_indices = @transform_2, window_bounds = array<i64: 1, 32, 96>}, {transform_indices = @transform_3, window_bounds = array<i64: 1, 1, 96>}, {transform_indices = @transform_4, window_bounds = array<i64: 1, 4, 8, 32>}, {transform_indices = @transform_5, window_bounds = array<i64: 1, 32, 2048>}, {transform_indices = @transform_6, window_bounds = array<i64: 1, 1, 2048>}, {transform_indices = @transform_7, window_bounds = array<i64: 1, 2048, 32>}, {transform_indices = @transform_8, window_bounds = array<i64: 1, 8, 32>}, {transform_indices = @transform_9, window_bounds = array<i64: 1, 8, 32>}]} {
    %c0_i32 = arith.constant 0 : i32
    %0 = arith.cmpi eq, %arg1, %c0_i32 : i32
    %1 = arith.extui %0 : i1 to i32
    %c0_i32_0 = arith.constant 0 : i32
    %2 = arith.cmpi ne, %1, %c0_i32_0 : i32
    scf.if %2 {
      %c0_47 = arith.constant 0 : index
      %c0_48 = arith.constant 0 : index
      %c0_49 = arith.constant 0 : index
      %128 = vector.load %arg2[%c0_47, %c0_48, %c0_49] : memref<1x8x32xf32, #tpu.memory_space<vmem>>, vector<1x8x32xf32>
      %129 = vector.shape_cast %128 : vector<1x8x32xf32> to vector<8x32xf32>
      %c0_50 = arith.constant 0 : index
      %c0_51 = arith.constant 0 : index
      %130 = vector.load %arg3[%c0_50, %c0_51] : memref<8x32xf32, #tpu.memory_space<vmem>>, vector<8x32xf32>
      %131 = arith.addf %129, %130 : vector<8x32xf32>
      %c0_52 = arith.constant 0 : index
      %c0_53 = arith.constant 0 : index
      %132 = vector.load %arg12[%c0_52, %c0_53] : memref<8x32xf32, #tpu.memory_space<vmem>>, vector<8x32xf32>
      tpu.vector_store %arg12[%c0_52, %c0_53], %131 {strides = array<i32>} : memref<8x32xf32, #tpu.memory_space<vmem>>, vector<8x32xf32>,
    } else {
    }
    %c0 = arith.constant 0 : index
    %c0_1 = arith.constant 0 : index
    %3 = vector.load %arg12[%c0, %c0_1] : memref<8x32xf32, #tpu.memory_space<vmem>>, vector<8x32xf32>
    %c0_2 = arith.constant 0 : index
    %c0_3 = arith.constant 0 : index
    %c0_4 = arith.constant 0 : index
    %4 = vector.load %arg4[%c0_2, %c0_3, %c0_4] : memref<1x32x96xf32, #tpu.memory_space<vmem>>, vector<1x32x96xf32>
    %5 = vector.shape_cast %4 : vector<1x32x96xf32> to vector<32x96xf32>
    %c0_5 = arith.constant 0 : index
    %c0_6 = arith.constant 0 : index
    %c0_7 = arith.constant 0 : index
    %6 = vector.load %arg5[%c0_5, %c0_6, %c0_7] : memref<1x1x96xf32, #tpu.memory_space<vmem>>, vector<1x1x96xf32>
    %7 = vector.shape_cast %6 : vector<1x1x96xf32> to vector<1x96xf32>
    %c0_8 = arith.constant 0 : index
    %c0_9 = arith.constant 0 : index
    %c0_10 = arith.constant 0 : index
    %c0_11 = arith.constant 0 : index
    %8 = vector.load %arg6[%c0_8, %c0_9, %c0_10, %c0_11] : memref<1x4x8x32xf32, #tpu.memory_space<vmem>>, vector<1x4x8x32xf32>
    %9 = vector.shape_cast %8 : vector<1x4x8x32xf32> to vector<4x8x32xf32>
    %c0_12 = arith.constant 0 : index
    %c0_13 = arith.constant 0 : index
    %c0_14 = arith.constant 0 : index
    %10 = vector.load %arg7[%c0_12, %c0_13, %c0_14] : memref<1x32x2048xf32, #tpu.memory_space<vmem>>, vector<1x32x2048xf32>
    %11 = vector.shape_cast %10 : vector<1x32x2048xf32> to vector<32x2048xf32>
    %c0_15 = arith.constant 0 : index
    %c0_16 = arith.constant 0 : index
    %c0_17 = arith.constant 0 : index
    %12 = vector.load %arg8[%c0_15, %c0_16, %c0_17] : memref<1x1x2048xf32, #tpu.memory_space<vmem>>, vector<1x1x2048xf32>
    %13 = vector.shape_cast %12 : vector<1x1x2048xf32> to vector<1x2048xf32>
    %c0_18 = arith.constant 0 : index
    %c0_19 = arith.constant 0 : index
    %c0_20 = arith.constant 0 : index
    %14 = vector.load %arg9[%c0_18, %c0_19, %c0_20] : memref<1x2048x32xf32, #tpu.memory_space<vmem>>, vector<1x2048x32xf32>
    %15 = vector.shape_cast %14 : vector<1x2048x32xf32> to vector<2048x32xf32>
    %c0_21 = arith.constant 0 : index
    %c0_22 = arith.constant 0 : index
    %c0_23 = arith.constant 0 : index
    %16 = vector.load %arg10[%c0_21, %c0_22, %c0_23] : memref<1x8x32xf32, #tpu.memory_space<vmem>>, vector<1x8x32xf32>
    %17 = vector.shape_cast %16 : vector<1x8x32xf32> to vector<8x32xf32>
    %18 = vector.extract_strided_slice %17 {offsets = [0, 0], sizes = [1, 32], strides = [1, 1]} : vector<8x32xf32> to vector<1x32xf32>
    %19 = vector.extract_strided_slice %17 {offsets = [1, 0], sizes = [1, 32], strides = [1, 1]} : vector<8x32xf32> to vector<1x32xf32>
    %20 = vector.extract_strided_slice %17 {offsets = [2, 0], sizes = [1, 32], strides = [1, 1]} : vector<8x32xf32> to vector<1x32xf32>
    %21 = vector.extract_strided_slice %17 {offsets = [3, 0], sizes = [1, 32], strides = [1, 1]} : vector<8x32xf32> to vector<1x32xf32>
    %22 = vector.extract_strided_slice %17 {offsets = [4, 0], sizes = [1, 32], strides = [1, 1]} : vector<8x32xf32> to vector<1x32xf32>
    %23 = vector.extract_strided_slice %17 {offsets = [5, 0], sizes = [1, 32], strides = [1, 1]} : vector<8x32xf32> to vector<1x32xf32>
    %cst = arith.constant dense<0.000000e+00> : vector<8x96xf32>
    %24 = tpu.matmul %3, %5, %cst {dimension_numbers = #tpu.dot_dimension_numbers<[1], [0], [0], [1], [0, 0, 1, 1], [], []>} : vector<8x32xf32>, vector<32x96xf32>, vector<8x96xf32> -> vector<8x96xf32>
    %25 = vector.broadcast %7 : vector<1x96xf32> to vector<8x96xf32>
    %26 = arith.addf %24, %25 : vector<8x96xf32>
    %27 = vector.extract_strided_slice %26 {offsets = [0, 0], sizes = [8, 8], strides = [1, 1]} : vector<8x96xf32> to vector<8x8xf32>
    %28 = vector.extract_strided_slice %26 {offsets = [0, 8], sizes = [8, 8], strides = [1, 1]} : vector<8x96xf32> to vector<8x8xf32>
    %29 = vector.extract_strided_slice %26 {offsets = [0, 16], sizes = [8, 8], strides = [1, 1]} : vector<8x96xf32> to vector<8x8xf32>
    %30 = vector.extract_strided_slice %26 {offsets = [0, 24], sizes = [8, 8], strides = [1, 1]} : vector<8x96xf32> to vector<8x8xf32>
    %31 = vector.shape_cast %27 : vector<8x8xf32> to vector<1x8x8xf32>
    %32 = vector.shape_cast %28 : vector<8x8xf32> to vector<1x8x8xf32>
    %33 = vector.shape_cast %29 : vector<8x8xf32> to vector<1x8x8xf32>
    %34 = vector.shape_cast %30 : vector<8x8xf32> to vector<1x8x8xf32>
    %35 = tpu.concatenate %31, %32, %33, %34 in 0 : vector<1x8x8xf32>, vector<1x8x8xf32>, vector<1x8x8xf32>, vector<1x8x8xf32> -> vector<4x8x8xf32>
    %36 = vector.extract_strided_slice %26 {offsets = [0, 32], sizes = [8, 8], strides = [1, 1]} : vector<8x96xf32> to vector<8x8xf32>
    %37 = vector.extract_strided_slice %26 {offsets = [0, 40], sizes = [8, 8], strides = [1, 1]} : vector<8x96xf32> to vector<8x8xf32>
    %38 = vector.extract_strided_slice %26 {offsets = [0, 48], sizes = [8, 8], strides = [1, 1]} : vector<8x96xf32> to vector<8x8xf32>
    %39 = vector.extract_strided_slice %26 {offsets = [0, 56], sizes = [8, 8], strides = [1, 1]} : vector<8x96xf32> to vector<8x8xf32>
    %40 = vector.shape_cast %36 : vector<8x8xf32> to vector<1x8x8xf32>
    %41 = vector.shape_cast %37 : vector<8x8xf32> to vector<1x8x8xf32>
    %42 = vector.shape_cast %38 : vector<8x8xf32> to vector<1x8x8xf32>
    %43 = vector.shape_cast %39 : vector<8x8xf32> to vector<1x8x8xf32>
    %44 = tpu.concatenate %40, %41, %42, %43 in 0 : vector<1x8x8xf32>, vector<1x8x8xf32>, vector<1x8x8xf32>, vector<1x8x8xf32> -> vector<4x8x8xf32>
    %45 = vector.extract_strided_slice %26 {offsets = [0, 64], sizes = [8, 8], strides = [1, 1]} : vector<8x96xf32> to vector<8x8xf32>
    %46 = vector.extract_strided_slice %26 {offsets = [0, 72], sizes = [8, 8], strides = [1, 1]} : vector<8x96xf32> to vector<8x8xf32>
    %47 = vector.extract_strided_slice %26 {offsets = [0, 80], sizes = [8, 8], strides = [1, 1]} : vector<8x96xf32> to vector<8x8xf32>
    %48 = vector.extract_strided_slice %26 {offsets = [0, 88], sizes = [8, 8], strides = [1, 1]} : vector<8x96xf32> to vector<8x8xf32>
    %49 = vector.shape_cast %45 : vector<8x8xf32> to vector<1x8x8xf32>
    %50 = vector.shape_cast %46 : vector<8x8xf32> to vector<1x8x8xf32>
    %51 = vector.shape_cast %47 : vector<8x8xf32> to vector<1x8x8xf32>
    %52 = vector.shape_cast %48 : vector<8x8xf32> to vector<1x8x8xf32>
    %53 = tpu.concatenate %49, %50, %51, %52 in 0 : vector<1x8x8xf32>, vector<1x8x8xf32>, vector<1x8x8xf32>, vector<1x8x8xf32> -> vector<4x8x8xf32>
    "tpu.trace_start"() <{level = 10 : i32, message = "hqd,hkd->hqk"}> : () -> ()
    %cst_24 = arith.constant dense<0.000000e+00> : vector<4x8x8xf32>
    %54 = tpu.matmul %35, %44, %cst_24 {dimension_numbers = #tpu.dot_dimension_numbers<[2], [2], [1], [1], [0, 0, 0, 1, 1, 1], [0], [0]>} : vector<4x8x8xf32>, vector<4x8x8xf32>, vector<4x8x8xf32> -> vector<4x8x8xf32>
    "tpu.trace_stop"() : () -> ()
    %cst_25 = arith.constant dense<0xFF800000> : vector<4x8xf32>
    %55 = vector.multi_reduction <maximumf>, %54, %cst_25 [2] : vector<4x8x8xf32> to vector<4x8xf32>
    %56 = vector.shape_cast %55 : vector<4x8xf32> to vector<4x8x1xf32>
    %57 = vector.broadcast %56 : vector<4x8x1xf32> to vector<4x8x8xf32>
    %58 = arith.subf %54, %57 : vector<4x8x8xf32>
    %59 = math.exp %58 : vector<4x8x8xf32>
    %cst_26 = arith.constant dense<0.000000e+00> : vector<4x8xf32>
    %60 = vector.multi_reduction <add>, %59, %cst_26 [2] : vector<4x8x8xf32> to vector<4x8xf32>
    %61 = vector.shape_cast %60 : vector<4x8xf32> to vector<4x8x1xf32>
    %62 = tpu.reciprocal %61 {approx = true} : vector<4x8x1xf32> -> vector<4x8x1xf32>
    %63 = arith.mulf %61, %62 : vector<4x8x1xf32>
    %cst_27 = arith.constant 2.000000e+00 : f32
    %64 = vector.broadcast %cst_27 : f32 to vector<4x8x1xf32>
    %65 = arith.subf %64, %63 : vector<4x8x1xf32>
    %66 = arith.mulf %62, %65 : vector<4x8x1xf32>
    %67 = vector.broadcast %66 : vector<4x8x1xf32> to vector<4x8x8xf32>
    %68 = arith.mulf %59, %67 : vector<4x8x8xf32>
    "tpu.trace_start"() <{level = 10 : i32, message = "hqk,hkd->hqd"}> : () -> ()
    %cst_28 = arith.constant dense<0.000000e+00> : vector<4x8x8xf32>
    %69 = tpu.matmul %68, %53, %cst_28 {dimension_numbers = #tpu.dot_dimension_numbers<[2], [1], [1], [2], [0, 0, 0, 1, 1, 2], [0], [0]>} : vector<4x8x8xf32>, vector<4x8x8xf32>, vector<4x8x8xf32> -> vector<4x8x8xf32>
    "tpu.trace_stop"() : () -> ()
    "tpu.trace_start"() <{level = 10 : i32, message = "hqd,hdn->hqn"}> : () -> ()
    %cst_29 = arith.constant dense<0.000000e+00> : vector<4x8x32xf32>
    %70 = tpu.matmul %69, %9, %cst_29 {dimension_numbers = #tpu.dot_dimension_numbers<[2], [1], [1], [2], [0, 0, 0, 1, 1, 2], [0], [0]>} : vector<4x8x8xf32>, vector<4x8x32xf32>, vector<4x8x32xf32> -> vector<4x8x32xf32>
    "tpu.trace_stop"() : () -> ()
    %cst_30 = arith.constant dense<0.000000e+00> : vector<8x32xf32>
    %71 = vector.multi_reduction <add>, %70, %cst_30 [0] : vector<4x8x32xf32> to vector<8x32xf32>
    %72 = vector.broadcast %18 : vector<1x32xf32> to vector<8x32xf32>
    %73 = arith.addf %71, %72 : vector<8x32xf32>
    %74 = arith.addf %3, %73 : vector<8x32xf32>
    %cst_31 = arith.constant dense<0.000000e+00> : vector<8xf32>
    %75 = vector.multi_reduction <add>, %74, %cst_31 [1] : vector<8x32xf32> to vector<8xf32>
    %76 = vector.shape_cast %75 : vector<8xf32> to vector<8x1xf32>
    %cst_32 = arith.constant 3.200000e+01 : f32
    %77 = vector.broadcast %cst_32 : f32 to vector<8x1xf32>
    %78 = arith.divf %76, %77 : vector<8x1xf32>
    %79 = vector.broadcast %78 : vector<8x1xf32> to vector<8x32xf32>
    %80 = arith.subf %74, %79 : vector<8x32xf32>
    %81 = arith.mulf %80, %80 : vector<8x32xf32>
    %cst_33 = arith.constant dense<0.000000e+00> : vector<8xf32>
    %82 = vector.multi_reduction <add>, %81, %cst_33 [1] : vector<8x32xf32> to vector<8xf32>
    %83 = vector.shape_cast %82 : vector<8xf32> to vector<8x1xf32>
    %cst_34 = arith.constant 3.200000e+01 : f32
    %84 = vector.broadcast %cst_34 : f32 to vector<8x1xf32>
    %85 = arith.divf %83, %84 : vector<8x1xf32>
    %cst_35 = arith.constant 9.99999974E-6 : f32
    %86 = vector.broadcast %cst_35 : f32 to vector<8x1xf32>
    %87 = arith.addf %85, %86 : vector<8x1xf32>
    %88 = math.rsqrt %87 : vector<8x1xf32>
    %89 = vector.broadcast %88 : vector<8x1xf32> to vector<8x32xf32>
    %90 = arith.mulf %80, %89 : vector<8x32xf32>
    %91 = vector.broadcast %19 : vector<1x32xf32> to vector<8x32xf32>
    %92 = arith.mulf %90, %91 : vector<8x32xf32>
    %93 = vector.broadcast %20 : vector<1x32xf32> to vector<8x32xf32>
    %94 = arith.addf %92, %93 : vector<8x32xf32>
    %cst_36 = arith.constant dense<0.000000e+00> : vector<8x2048xf32>
    %95 = tpu.matmul %94, %11, %cst_36 {dimension_numbers = #tpu.dot_dimension_numbers<[1], [0], [0], [1], [0, 0, 1, 1], [], []>} : vector<8x32xf32>, vector<32x2048xf32>, vector<8x2048xf32> -> vector<8x2048xf32>
    %96 = vector.broadcast %13 : vector<1x2048xf32> to vector<8x2048xf32>
    %97 = arith.addf %95, %96 : vector<8x2048xf32>
    %cst_37 = arith.constant 0.000000e+00 : f32
    %98 = vector.broadcast %cst_37 : f32 to vector<8x2048xf32>
    %99 = arith.maximumf %97, %98 : vector<8x2048xf32>
    %cst_38 = arith.constant dense<0.000000e+00> : vector<8x32xf32>
    %100 = tpu.matmul %99, %15, %cst_38 {dimension_numbers = #tpu.dot_dimension_numbers<[1], [0], [0], [1], [0, 0, 1, 1], [], []>} : vector<8x2048xf32>, vector<2048x32xf32>, vector<8x32xf32> -> vector<8x32xf32>
    %101 = vector.broadcast %21 : vector<1x32xf32> to vector<8x32xf32>
    %102 = arith.addf %100, %101 : vector<8x32xf32>
    %103 = arith.addf %94, %102 : vector<8x32xf32>
    %cst_39 = arith.constant dense<0.000000e+00> : vector<8xf32>
    %104 = vector.multi_reduction <add>, %103, %cst_39 [1] : vector<8x32xf32> to vector<8xf32>
    %105 = vector.shape_cast %104 : vector<8xf32> to vector<8x1xf32>
    %cst_40 = arith.constant 3.200000e+01 : f32
    %106 = vector.broadcast %cst_40 : f32 to vector<8x1xf32>
    %107 = arith.divf %105, %106 : vector<8x1xf32>
    %108 = vector.broadcast %107 : vector<8x1xf32> to vector<8x32xf32>
    %109 = arith.subf %103, %108 : vector<8x32xf32>
    %110 = arith.mulf %109, %109 : vector<8x32xf32>
    %cst_41 = arith.constant dense<0.000000e+00> : vector<8xf32>
    %111 = vector.multi_reduction <add>, %110, %cst_41 [1] : vector<8x32xf32> to vector<8xf32>
    %112 = vector.shape_cast %111 : vector<8xf32> to vector<8x1xf32>
    %cst_42 = arith.constant 3.200000e+01 : f32
    %113 = vector.broadcast %cst_42 : f32 to vector<8x1xf32>
    %114 = arith.divf %112, %113 : vector<8x1xf32>
    %cst_43 = arith.constant 9.99999974E-6 : f32
    %115 = vector.broadcast %cst_43 : f32 to vector<8x1xf32>
    %116 = arith.addf %114, %115 : vector<8x1xf32>
    %117 = math.rsqrt %116 : vector<8x1xf32>
    %118 = vector.broadcast %117 : vector<8x1xf32> to vector<8x32xf32>
    %119 = arith.mulf %109, %118 : vector<8x32xf32>
    %120 = vector.broadcast %22 : vector<1x32xf32> to vector<8x32xf32>
    %121 = arith.mulf %119, %120 : vector<8x32xf32>
    %122 = vector.broadcast %23 : vector<1x32xf32> to vector<8x32xf32>
    %123 = arith.addf %121, %122 : vector<8x32xf32>
    %c0_44 = arith.constant 0 : index
    %c0_45 = arith.constant 0 : index
    %124 = vector.load %arg12[%c0_44, %c0_45] : memref<8x32xf32, #tpu.memory_space<vmem>>, vector<8x32xf32>
    tpu.vector_store %arg12[%c0_44, %c0_45], %123 {strides = array<i32>} : memref<8x32xf32, #tpu.memory_space<vmem>>, vector<8x32xf32>,
    %c1_i32 = arith.constant 1 : i32
    %125 = arith.cmpi eq, %arg1, %c1_i32 : i32
    %126 = arith.extui %125 : i1 to i32
    %c0_i32_46 = arith.constant 0 : i32
    %127 = arith.cmpi ne, %126, %c0_i32_46 : i32
    scf.if %127 {
      %c0_47 = arith.constant 0 : index
      %c0_48 = arith.constant 0 : index
      %c0_49 = arith.constant 0 : index
      %128 = vector.load %arg11[%c0_47, %c0_48, %c0_49] : memref<1x8x32xf32, #tpu.memory_space<vmem>>, vector<1x8x32xf32>
      %129 = vector.shape_cast %128 : vector<1x8x32xf32> to vector<8x32xf32>
      %130 = vector.shape_cast %123 : vector<8x32xf32> to vector<1x8x32xf32>
      tpu.vector_store %arg11[%c0_47, %c0_48, %c0_49], %130 {strides = array<i32>} : memref<1x8x32xf32, #tpu.memory_space<vmem>>, vector<1x8x32xf32>,
    } else {
    }
    return
  }
  func.func @transform_0(%arg0: i32, %arg1: i32) -> (i32, i32, i32) {
    %c0_i32 = arith.constant 0 : i32
    %c0_i32_0 = arith.constant 0 : i32
    %c0_i32_1 = arith.constant 0 : i32
    return %arg0, %c0_i32, %c0_i32_0 : i32, i32, i32
  }
  func.func @transform_1(%arg0: i32, %arg1: i32) -> (i32, i32) {
    %c0_i32 = arith.constant 0 : i32
    %c0_i32_0 = arith.constant 0 : i32
    %c0_i32_1 = arith.constant 0 : i32
    return %c0_i32, %c0_i32_0 : i32, i32
  }
  func.func @transform_2(%arg0: i32, %arg1: i32) -> (i32, i32, i32) {
    %c0_i32 = arith.constant 0 : i32
    %c0_i32_0 = arith.constant 0 : i32
    %c0_i32_1 = arith.constant 0 : i32
    return %arg1, %c0_i32, %c0_i32_0 : i32, i32, i32
  }
  func.func @transform_3(%arg0: i32, %arg1: i32) -> (i32, i32, i32) {
    %c0_i32 = arith.constant 0 : i32
    %c0_i32_0 = arith.constant 0 : i32
    %c0_i32_1 = arith.constant 0 : i32
    return %arg1, %c0_i32, %c0_i32_0 : i32, i32, i32
  }
  func.func @transform_4(%arg0: i32, %arg1: i32) -> (i32, i32, i32, i32) {
    %c0_i32 = arith.constant 0 : i32
    %c0_i32_0 = arith.constant 0 : i32
    %c0_i32_1 = arith.constant 0 : i32
    %c0_i32_2 = arith.constant 0 : i32
    return %arg1, %c0_i32, %c0_i32_0, %c0_i32_1 : i32, i32, i32, i32
  }
  func.func @transform_5(%arg0: i32, %arg1: i32) -> (i32, i32, i32) {
    %c0_i32 = arith.constant 0 : i32
    %c0_i32_0 = arith.constant 0 : i32
    %c0_i32_1 = arith.constant 0 : i32
    return %arg1, %c0_i32, %c0_i32_0 : i32, i32, i32
  }
  func.func @transform_6(%arg0: i32, %arg1: i32) -> (i32, i32, i32) {
    %c0_i32 = arith.constant 0 : i32
    %c0_i32_0 = arith.constant 0 : i32
    %c0_i32_1 = arith.constant 0 : i32
    return %arg1, %c0_i32, %c0_i32_0 : i32, i32, i32
  }
  func.func @transform_7(%arg0: i32, %arg1: i32) -> (i32, i32, i32) {
    %c0_i32 = arith.constant 0 : i32
    %c0_i32_0 = arith.constant 0 : i32
    %c0_i32_1 = arith.constant 0 : i32
    return %arg1, %c0_i32, %c0_i32_0 : i32, i32, i32
  }
  func.func @transform_8(%arg0: i32, %arg1: i32) -> (i32, i32, i32) {
    %c0_i32 = arith.constant 0 : i32
    %c0_i32_0 = arith.constant 0 : i32
    %c0_i32_1 = arith.constant 0 : i32
    return %arg1, %c0_i32, %c0_i32_0 : i32, i32, i32
  }
  func.func @transform_9(%arg0: i32, %arg1: i32) -> (i32, i32, i32) {
    %c0_i32 = arith.constant 0 : i32
    %c0_i32_0 = arith.constant 0 : i32
    %c0_i32_1 = arith.constant 0 : i32
    return %arg0, %c0_i32, %c0_i32_0 : i32, i32, i32
  }
}

</mosaic_0001>

<bundles_post_ra>
// kernel: encoder_transformer_forward.1
= control target key start
LH: loop header
LB: loop body
LE: loop exit
PB: predicated region body
PF: predicated region fallthrough
CT: control target
= control target key end

     0   :  { %s4746_s0 = inlined_call_operand.vmem [shape: f32[2,8,32], index: 0, kind: input, shape index: {}]   ;;  %s4747_s1 = inlined_call_operand.vmem [shape: f32[8,32], index: 1, kind: input, shape index: {}]   ;;  %s4748_s2 = inlined_call_operand.vmem [shape: f32[2,32,96], index: 2, kind: input, shape index: {}]   ;;  %s4749_s3 = inlined_call_operand.vmem [shape: f32[2,1,96], index: 3, kind: input, shape index: {}]   ;;  %s4750_s4 = inlined_call_operand.vmem [shape: f32[2,4,8,32], index: 4, kind: input, shape index: {}]   ;;  %s4751_s5 = inlined_call_operand.vmem [shape: f32[2,32,2048], index: 5, kind: input, shape index: {}]   ;;  %s4752_s6 = inlined_call_operand.vmem [shape: f32[2,1,2048], index: 6, kind: input, shape index: {}]   ;;  %s4753_s7 = inlined_call_operand.vmem [shape: f32[2,2048,32], index: 7, kind: input, shape index: {}]   ;;  %s4754_s8 = inlined_call_operand.vmem [shape: f32[2,8,32], index: 8, kind: input, shape index: {}]   ;;  %s4755_s9 = inlined_call_operand.hbm [shape: f32[2,8,32], index: 9, kind: output, shape index: {}]  }
   0x1   :  { %4768 = sst [smem:[#allocation16_spill]] %s4746_s0 }
   0x2   :  { %4769 = sst [smem:[#allocation17_spill]] %s4748_s2 }
   0x3   :  { %4770 = sst [smem:[#allocation18_spill]] %s4755_s9 }
   0x4   :  { %14 = vsyncpa [#allocation4], 0 }
   0x5   :  { %16 = vsyncpa [#allocation4 + $0x1], 0  ;;  %s4003_s30 = smov 0   ;;  %s4005_s10 = smov 0  }
   0x6   :  { %s4007_s11 = smov 0   ;;  %s4009_s12 = smov 0  }
   0x7   :  { %s4011_s13 = smov 0   ;;  %s4013_s14 = smov 0  }
   0x8   :  { %s4015_s15 = smov 0   ;;  %s4017_s16 = smov 0  }
   0x9 LB: > { %4771 = sst [smem:[#allocation6_spill]] %s3915_s30  ;;  %s3319_s17 = sadd.s32 4294967295, %s3943_s16   ;;  %s3943_s16 = sphi %s4017_s16, %s22_s16   ;;  %s3939_s15 = sphi %s4015_s15, %s4797_s15   ;;  %s3935_s14 = sphi %s4013_s14, %s4796_s14   ;;  %s3931_s13 = sphi %s4011_s13, %s4795_s13   ;;  %s3927_s12 = sphi %s4009_s12, %s4794_s12   ;;  %s3923_s11 = sphi %s4007_s11, %s4793_s11   ;;  %s3919_s10 = sphi %s4005_s10, %s4799_s10   ;;  %s3915_s30 = sphi %s4003_s30, %s4798_s30  }
   0xa   : > { %4772 = sst [smem:[#allocation7_spill]] %s3923_s11  ;;  %s3320_s18 = sadd.s32 4294967294, %s3943_s16  }
   0xb   : > { %4773 = sst [smem:[#allocation8_spill]] %s3935_s14  ;;  %s31_s19 = sadd.s32 1, %s3935_s14 }
   0xc   : > { %4774 = sst [smem:[#allocation9_spill]] %s3939_s15  ;;  %p32_p0 = scmp.ge.s32.totalorder %s31_s19, 2 }
   0xd   : > { %4775 = sst [smem:[#allocation10_spill]] %s3943_s16  ;;  %s34_s20 = sadd.s32 1, %s3939_s15 }
   0xe   : > { %p280_p1 = scmp.ne.s32.totalorder %s3923_s11, %s3919_s10  ;;  %p281_p2 = scmp.eq.s32.totalorder %s3319_s17, 3 }
   0xf   : > { %s4801_s19 = smov (%p32_p0, %s31_s19), 0  ;;  %s4803_s20 = smov (!%p32_p0, %s34_s20), %s3939_s15 }
  0x10   : > { %4776 = sst [smem:[#allocation11_spill]] %s4801_s19  ;;  %p4052_p3 = por %p281_p2, %p280_p1 }
  0x11   : > { %p286_p4 = scmp.ne.s32.totalorder %s3919_s10, %s3915_s30  ;;  %p36_p5 = scmp.ge.s32.totalorder %s4803_s20, 2 }
  0x12   : > { %s4777_s21 = scalar_select %p4052_p3, 1, 0 }
  0x13   : > { %p287_p6 = scmp.eq.s32.totalorder %s3320_s18, 3  ;;  %p3323_p7 = scmp.ge.s32.totalorder %s3943_s16, 1 }
  0x14   : > { %4778 = sst [smem:[#allocation12_spill]] %s4777_s21  ;;  %p367_p8 = scmp.lt.s32.totalorder %s3943_s16, 5 }
  0x15   : > { %s4805_s20 = smov (%p36_p5, %s4803_s20), 0  ;;  %p4062_p9 = por %p287_p6, %p286_p4 }
  0x16   : > { %4779 = sst [smem:[#allocation13_spill]] %s4805_s20  ;;  %p368_p10 = pnand %p3323_p7, %p367_p8 }
  0x17   : > { %s4780_s22 = scalar_select %p4062_p9, 1, 0 }
  0x18   : > { %s267_s23 = ssub.s32 %s3939_s15, %s4805_s20  ;;  %s270_s24 = sadd.s32 1, %s3923_s11 }
  0x19   : > { %4781 = sst [smem:[#allocation14_spill]] %s4780_s22  ;;  %p268_p11 = scmp.eq.s32.totalorder %s267_s23, 0 }
  0x1a   : > { %371 = sbr.rel (%p368_p10) target bundleno = 2593 (0xa21), region = 56  ;;  %s4757_s26 = sand.u32 (!%p368_p10), 1, %s3919_s10  }
  0x1b   : > { %s4070_s25 = scalar_select %p268_p11, %s3923_s11, %s270_s24  }
  0x1c   : > { %p433_p12 = scmp.lt.s32.totalorder (!%p368_p10), %s3931_s13, 1  ;;  %s4076_s27 = sshll.u32 (!%p368_p10), %s4757_s26, 3 }
  0x1d   : > { %4782 = sst [smem:[#allocation15_spill]] %s4070_s25  ;;  %p437_p13 = scmp.lt.s32.totalorder (!%p368_p10), %s3927_s12, 1 }
  0x1e   : > { %s4783_s0 = sld [smem:[#allocation16_spill]] (!%p368_p10)  ;;  %s432_s9 = scalar_lea.vmem (!%p368_p10), [#allocation3], %s4076_s27 }
  0x1f   : > { %s434_s28 = scalar_select %p433_p12, %s3931_s13, 1 }
  0x20   : > { %s4081_s29 = scalar_select %p437_p13, %s3927_s12, 1 }
  0x21   : > { %s3325_s17 = sshll.u32 %s434_s28, 3  ;;  %s4784_s2 = sld [smem:[#allocation17_spill]] }
  0x22   : > { %s3368_s20 = sshll.u32 %s4081_s29, 5  ;;  %s3370_s28 = sshll.u32 %s4081_s29, 9 }
  0x23   : > { %s4099_s16 = scalar_lea.vmem %s4750_s4, %s3368_s20  ;;  %s3332_s18 = sshll.u32 %s4081_s29, 4 }
  0x24   : > { %s436_s24 = scalar_lea.vmem %s4783_s0, %s3325_s17  ;;  %s4105_s17 = scalar_lea.vmem %s4751_s5, %s3370_s28 }
  0x25   : > { %s4111_s26 = scalar_lea.vmem %s4752_s6, %s3332_s18  ;;  %s3371_s0 = sshll.u32 %s4081_s29, 11 }
  0x26   : > { %s4117_s11 = scalar_lea.vmem %s4753_s7, %s3371_s0  ;;  %s3335_s30 = sshll.u32 %s4081_s29, 3 }
  0x27   : > { %s4090_s15 = scalar_lea.vmem %s4784_s2, %s3368_s20  ;;  %s4123_s2 = scalar_lea.vmem %s4754_s8, %s3335_s30 }
  0x28   : > { %p3336_p0 = scmp.ne.s32.totalorder %s3927_s12, 0 }
  0x2a   : > { %471 = sbr.rel (%p3336_p0) target bundleno = 52 (0x34), region = 60 }
  0x2f   : > { %v472_v0 = vld [vmem:[%s436_s24] sm:$0xff]  ;;  %vm475_vm0 = vcmask 261120  }
  0x30   : > { %v473_v1 = vld [vmem:[%s4747_s1] sm:$0xff] }
  0x31   : > { %v474_v2 = vadd.f32 %v473_v1, %v472_v0 }
  0x33   : > { %476 = vst.msk [vmem:[#allocation2] sm:$0xff] %vm475_vm0, %v474_v2 }
  0x34 PF: > { %v481_v3 = vld [vmem:[%s4090_s15 + $0x18] sm:$0xff]  ;;  %v3945_v4 = vmov 0.0   ;;  %v480_v5 = vld [vmem:[%s4090_s15 + $0x10] sm:$0xff]  ;;  %vm3946_vm1 = vmmov 0   ;;  %v479_v6 = vld [vmem:[%s4090_s15 + $0x8] sm:$0xff]  ;;  %vm816_vm2 = vcmask 261120   ;;  %s4785_s18 = scalar_lea.vmem %s4749_s3, %s4081_s29 }
  0x35   : > { %3681 = vmatprep.subr.mxu0 %v3945_v4  ;;  %3689 = vmatprep.mubr.msk.f32.mxu0 %vm3946_vm1, %v3945_v4  ;;  %v478_v7 = vld [vmem:[%s4090_s15] sm:$0xff]  ;;  %s3947_s15 = smov 104   ;;  %s3948_s23 = smov 120   ;;  %vm899_vm3 = vcmask 64512  }
  0x36   : > { %3682 = vmatpush3.msra.mxu0 %v481_v3  ;;  %3692 = vmatprep.subr.mxu1 %v3945_v4  ;;  %v3337_v9 = vld [vmem:[%s4785_s18] ss:$0 sm:$0xff]  ;;  %s3949_s19 = smov 96   ;;  %s3950_s14 = smov 112  }
  0x37   : > { %3683 = vmatprep.subr.mxu0 %v3945_v4  ;;  %3694 = vmatprep.mubr.msk.f32.mxu1 %vm3946_vm1, %v3945_v4  ;;  %s3951_s29 = smov 64   ;;  %p3363_p1 = scmp.ne.s32.totalorder %s3927_s12, 1 }
  0x38   : > { %3684 = vmatpush3.msra.mxu0 %v480_v5 }
  0x39   : > { %3685 = vmatprep.subr.mxu0 %v3945_v4 }
  0x3a   : > { %3686 = vmatpush3.msra.mxu0 %v479_v6  ;;  %v4142_v8 = vld [vmem:[#allocation2] sm:$0xff] }
  0x3b   : > { %3687 = vmatprep.subr.mxu0 %v3945_v4 }
  0x3c   : > { %3688 = vmatpush3.msra.mxu0 %v478_v7 }
  0x3d   : > { %3690 = vmatmul.mubr.msk.f32.vlgmr.msra.gmra.mxu0 %vm816_vm2, %v4142_v8  ;;  %3702 = vmatprep.subr.mxu0 %v3945_v4 }
  0x3e   : > { %3704 = vmatprep.mubr.msk.f32.mxu0 %vm3946_vm1, %v3945_v4 }
  0xfd   : > { %v886_v10 = vpop.f32.mrf.mxu0 }
  0xfe   : > { %v4155_v11 = vadd.f32 %v3337_v9, %v886_v10 }
  0xff   : > { %v3691_v12 = vpop.f32.mrf.mxu0 }
 0x100   : > { %895 = vrot.lane.b32.xlu1 %v4155_v11, %s3947_s15  ;;  %891 = vrot.lane.b32.xlu0 %v4155_v11, %s3948_s23 }
 0x104   : > { %897 = vrot.lane.b32.xlu1 %v4155_v11, %s3949_s19  ;;  %893 = vrot.lane.b32.xlu0 %v4155_v11, %s3950_s14 }
 0x172   : > { %v4161_v13 = vpop.permute.xlu1 %895  ;;  %v4163_v14 = vpop.permute.xlu0 %891 }
 0x173   : > { %974 = vrot.lane.b32.xlu0 %v4163_v14, %s3949_s19 }
 0x176   : > { %v898_v15 = vpop.permute.xlu1 %897  ;;  %v4166_v16 = vpop.permute.xlu0 %893 }
 0x177   : > { %3693 = vmatpush3.xpose.msk.msra.mxu1 %vm899_vm3, %v898_v15  ;;  %1126 = vrot.lane.b32.xlu0 %v4161_v13, %s3949_s19 }
 0x178   : > { %1050 = vrot.lane.b32.xlu1 %v4166_v16, %s3949_s19  ;;  %3697 = vmatprep.subr.mxu1 %v3945_v4 }
 0x17a   : > { %3695 = vmatmul.mubr.msk.f32.vlgmr.msra.gmra.mxu1 %vm899_vm3, %v4155_v11 }
 0x17b   : > { %3699 = vmatprep.mubr.msk.f32.mxu1 %vm3946_vm1, %v3945_v4 }
 0x1e5   : > { %v975_v17 = vpop.permute.xlu0 %974 }
 0x1e6   : > { %3698 = vmatpush3.xpose.msk.msra.mxu1 %vm899_vm3, %v975_v17 }
 0x1e7   : > { %3707 = vmatprep.subr.mxu1 %v3945_v4 }
 0x1e9   : > { %3700 = vmatmul.mubr.msk.f32.vlgmr.msra.gmra.mxu1 %vm899_vm3, %v4163_v14  ;;  %v1127_v18 = vpop.permute.xlu0 %1126 }
 0x1ea   : > { %v1051_v19 = vpop.permute.xlu1 %1050  ;;  %3708 = vmatpush3.xpose.msk.msra.mxu1 %vm899_vm3, %v1127_v18  ;;  %3709 = vmatprep.mubr.msk.f32.mxu1 %vm3946_vm1, %v3945_v4  ;;  %v483_v18 = vld [vmem:[%s4099_s16] sm:$0xff] }
 0x1eb   : > { %3703 = vmatpush3.xpose.msk.msra.mxu0 %vm899_vm3, %v1051_v19  ;;  %3717 = vmatprep.subr.mxu1 %v3945_v4  ;;  %v484_v19 = vld [vmem:[%s4099_s16 + $0x8] sm:$0xff] }
 0x1ec   : > { %3712 = vmatprep.subr.mxu0 %v3945_v4 }
 0x1ed   : > { %3710 = vmatmul.mubr.msk.f32.vlgmr.msra.gmra.mxu1 %vm899_vm3, %v4161_v13 }
 0x1ee   : > { %3705 = vmatmul.mubr.msk.f32.vlgmr.msra.gmra.mxu0 %vm899_vm3, %v4166_v16  ;;  %3719 = vmatprep.mubr.msk.f32.mxu1 %vm3946_vm1, %v3945_v4 }
 0x1ef   : > { %3714 = vmatprep.mubr.msk.f32.mxu0 %vm3946_vm1, %v3945_v4 }
 0x23a   : > { %v970_v20 = vpop.f32.mrf.mxu1 }
 0x23b   : > { %v1202_v21 = vsel %vm899_vm3, %v970_v20, -inf }
 0x23c   : > { %v3696_v22 = vpop.f32.mrf.mxu1  ;;  %1203 = vmax.xlane.f32.xlu1 %v1202_v21 }
 0x2a9   : > { %v1046_v23 = vpop.f32.mrf.mxu1 }
 0x2aa   : > { %v1205_v24 = vsel %vm899_vm3, %v1046_v23, -inf }
 0x2ab   : > { %1206 = vmax.xlane.f32.xlu0 %v1205_v24  ;;  %v3701_v25 = vpop.f32.mrf.mxu1 }
 0x2ad   : > { %v1198_v26 = vpop.f32.mrf.mxu1 }
 0x2ae   : > { %v1122_v27 = vpop.f32.mrf.mxu0  ;;  %v1211_v28 = vsel %vm899_vm3, %v1198_v26, -inf }
 0x2af   : > { %1212 = vmax.xlane.f32.xlu1 %v1211_v28  ;;  %v3711_v29 = vpop.f32.mrf.mxu1  ;;  %v1208_v30 = vsel %vm899_vm3, %v1122_v27, -inf }
 0x2b0   : > { %1209 = vmax.xlane.f32.xlu0 %v1208_v30  ;;  %v3706_v31 = vpop.f32.mrf.mxu0 }
 0x2c5   : > { %v1204_v32 = vpop.xlane.xlu1 %1203 }
 0x2c6   : > { %v1214_v33 = vsub.f32 %v970_v20, %v1204_v32  ;;  %v485_v20 = vld [vmem:[%s4099_s16 + $0x10] sm:$0xff] }
 0x2c8   : > { %v1218_v34 = vmul.f32 1.442695, %v1214_v33 }
 0x2ca   : > { %3830 = vpow2.f32 %v1218_v34 }
 0x2d7   : > { %v3831_v35 = vpop.eup %3830 }
 0x2d8   : > { %v1226_v36 = vsel %vm899_vm3, %v3831_v35, 0.0 }
 0x2d9   : > { %1227 = vadd.xlane.f32.xlu0 %v1226_v36  ;;  %v1861_v36 = vlaneseq }
 0x334   : > { %v1207_v37 = vpop.xlane.xlu0 %1206 }
 0x335   : > { %v1215_v38 = vsub.f32 %v1046_v23, %v1207_v37  ;;  %v486_v23 = vld [vmem:[%s4099_s16 + $0x18] sm:$0xff]  ;;  %v4238_v37 = vshrl.u32 %v1861_v36, 7  ;;  %v491_v36 = vld [vmem:[%s4105_s17 + $0x20] sm:$0xff] }
 0x337   : > { %v1220_v39 = vmul.f32 1.442695, %v1215_v38 }
 0x338   : > { %v1213_v47 = vpop.xlane.xlu1 %1212 }
 0x339   : > { %3832 = vpow2.f32 %v1220_v39  ;;  %v1210_v40 = vpop.xlane.xlu0 %1209  ;;  %v1217_v48 = vsub.f32 %v1198_v26, %v1213_v47  ;;  %v4242_v39 = vsub.s32 0, %v4238_v37 }
 0x33a   : > { %v1216_v41 = vsub.f32 %v1122_v27, %v1210_v40 }
 0x33b   : > { %v1224_v49 = vmul.f32 1.442695, %v1217_v48 }
 0x33c   : > { %v1222_v42 = vmul.f32 1.442695, %v1216_v41 }
 0x33e   : > { %3834 = vpow2.f32 %v1222_v42  ;;  %v4247_v42 = vld [vmem:[%s4123_s2] sm:$0xff] }
 0x33f   : > { %3836 = vpow2.f32 %v1224_v49 }
 0x346   : > { %v3833_v43 = vpop.eup %3832 }
 0x347   : > { %v1229_v44 = vsel %vm899_vm3, %v3833_v43, 0.0 }
 0x348   : > { %1230 = vadd.xlane.f32.xlu1 %v1229_v44 }
 0x34b   : > { %v3835_v45 = vpop.eup %3834 }
 0x34c   : > { %v1232_v46 = vsel %vm899_vm3, %v3835_v45, 0.0  ;;  %v3837_v50 = vpop.eup %3836 }
 0x34d   : > { %1233 = vadd.xlane.f32.xlu0 %v1232_v46  ;;  %v1235_v51 = vsel %vm899_vm3, %v3837_v50, 0.0  ;;  %v1864_v46 = vrot.slane %v4247_v42, %v4242_v39 }
 0x359   : > { %1334 = vrot.lane.b32.xlu1 %v4163_v14, %s3951_s29 }
 0x362   : > { %v1228_v52 = vpop.xlane.xlu0 %1227 }
 0x363   : > { %1258 = vrot.lane.b32.xlu0 %v4155_v11, %s3951_s29  ;;  %3838 = vrcp.f32 %v1228_v52 }
 0x367   : > { %1486 = vrot.lane.b32.xlu0 %v4161_v13, %s3951_s29 }
 0x370   : > { %v3839_v53 = vpop.eup %3838 }
 0x371   : > { %v1242_v54 = vmul.f32 %v3839_v53, %v1228_v52 }
 0x373   : > { %v1246_v56 = vsub.f32 2.0, %v1242_v54 }
 0x375   : > { %v1250_v58 = vmul.f32 %v3839_v53, %v1246_v56 }
 0x377   : > { %v1254_v60 = vmul.f32 %v3831_v35, %v1250_v58  ;;  %v536_v58 = vld [vmem:[%s4105_s17 + $0x188] sm:$0xff] }
 0x37d   : > { %1236 = vadd.xlane.f32.xlu1 %v1235_v51 }
 0x38e   : > { %1410 = vrot.lane.b32.xlu1 %v4166_v16, %s3951_s29 }
 0x3d1   : > { %v1231_v55 = vpop.xlane.xlu1 %1230 }
 0x3d2   : > { %3840 = vrcp.f32 %v1231_v55 }
 0x3d5   : > { %v1335_v57 = vpop.permute.xlu1 %1334 }
 0x3d6   : > { %v1234_v59 = vpop.xlane.xlu0 %1233  ;;  %3718 = vmatpush3.msra.mxu1 %v1335_v57 }
 0x3d7   : > { %3727 = vmatprep.subr.mxu1 %v3945_v4  ;;  %3842 = vrcp.f32 %v1234_v59 }
 0x3da   : > { %v1259_v61 = vpop.permute.xlu0 %1258 }
 0x3db   : > { %3713 = vmatpush3.msra.mxu0 %v1259_v61  ;;  %v520_v61 = vld [vmem:[%s4105_s17 + $0x108] sm:$0xff] }
 0x3dc   : > { %3715 = vmatmul.mubr.msk.f32.vlgmr.msra.gmra.mxu0 %vm899_vm3, %v1254_v60  ;;  %3722 = vmatprep.subr.mxu0 %v3945_v4  ;;  %v537_v60 = vld [vmem:[%s4105_s17 + $0x190] sm:$0xff] }
 0x3dd   : > { %3724 = vmatprep.mubr.msk.f32.mxu0 %vm3946_vm1, %v3945_v4 }
 0x3de   : > { %v1487_v3 = vpop.permute.xlu0 %1486 }
 0x3df   : > { %v3841_v62 = vpop.eup %3840 }
 0x3e0   : > { %v1243_v63 = vmul.f32 %v3841_v62, %v1231_v55 }
 0x3e2   : > { %v1247_v0 = vsub.f32 2.0, %v1243_v63  ;;  %v519_v63 = vld [vmem:[%s4105_s17 + $0x100] sm:$0xff] }
 0x3e4   : > { %v1251_v1 = vmul.f32 %v3841_v62, %v1247_v0  ;;  %v3843_v5 = vpop.eup %3842  ;;  %v522_v62 = vld [vmem:[%s4105_s17 + $0x118] sm:$0xff]  ;;  %v521_v0 = vld [vmem:[%s4105_s17 + $0x110] sm:$0xff] }
 0x3e5   : > { %v1244_v6 = vmul.f32 %v3843_v5, %v1234_v59  ;;  %v538_v59 = vld [vmem:[%s4105_s17 + $0x198] sm:$0xff] }
 0x3e6   : > { %v1255_v2 = vmul.f32 %v3833_v43, %v1251_v1  ;;  %v504_v1 = vld [vmem:[%s4105_s17 + $0x88] sm:$0xff] }
 0x3e7   : > { %v1248_v7 = vsub.f32 2.0, %v1244_v6  ;;  %v488_v6 = vld [vmem:[%s4105_s17 + $0x8] sm:$0xff] }
 0x3e8   : > { %3720 = vmatmul.mubr.msk.f32.vlgmr.msra.gmra.mxu1 %vm899_vm3, %v1255_v2  ;;  %v506_v2 = vld [vmem:[%s4105_s17 + $0x98] sm:$0xff] }
 0x3e9   : > { %3728 = vmatpush3.msra.mxu1 %v1487_v3  ;;  %3729 = vmatprep.mubr.msk.f32.mxu1 %vm3946_vm1, %v3945_v4  ;;  %v1252_v9 = vmul.f32 %v3843_v5, %v1248_v7  ;;  %v503_v3 = vld [vmem:[%s4105_s17 + $0x80] sm:$0xff]  ;;  %v505_v5 = vld [vmem:[%s4105_s17 + $0x90] sm:$0xff]  ;;  %v490_v7 = vld [vmem:[%s4105_s17 + $0x18] sm:$0xff] }
 0x3ea   : > { %3737 = vmatprep.subr.mxu1 %v3945_v4 }
 0x3eb   : > { %v1256_v11 = vmul.f32 %v3835_v45, %v1252_v9  ;;  %v487_v9 = vld [vmem:[%s4105_s17] sm:$0xff] }
 0x406   : > { %v1237_v10 = vpop.xlane.xlu1 %1236 }
 0x407   : > { %3844 = vrcp.f32 %v1237_v10 }
 0x40a   : > { %v1411_v12 = vpop.permute.xlu1 %1410 }
 0x40b   : > { %3723 = vmatpush3.msra.mxu0 %v1411_v12  ;;  %v542_v12 = vld [vmem:[%s4105_s17 + $0x1b8] sm:$0xff] }
 0x40c   : > { %3725 = vmatmul.mubr.msk.f32.vlgmr.msra.gmra.mxu0 %vm899_vm3, %v1256_v11  ;;  %3732 = vmatprep.subr.mxu0 %v3945_v4  ;;  %v540_v11 = vld [vmem:[%s4105_s17 + $0x1a8] sm:$0xff] }
 0x40d   : > { %3734 = vmatprep.mubr.msk.f32.mxu0 %vm3946_vm1, %v3945_v4  ;;  %3733 = vmatpush3.msra.mxu0 %v483_v18 }
 0x40e   : > { %3742 = vmatprep.subr.mxu0 %v3945_v4 }
 0x414   : > { %v3845_v13 = vpop.eup %3844 }
 0x415   : > { %v1245_v14 = vmul.f32 %v3845_v13, %v1237_v10  ;;  %v489_v10 = vld [vmem:[%s4105_s17 + $0x10] sm:$0xff] }
 0x417   : > { %v1249_v15 = vsub.f32 2.0, %v1245_v14 }
 0x419   : > { %v1253_v16 = vmul.f32 %v3845_v13, %v1249_v15 }
 0x41b   : > { %v1257_v17 = vmul.f32 %v3837_v50, %v1253_v16  ;;  %v4274_v16 = vsub.s32 1, %v4238_v37 }
 0x41d   : > { %3730 = vmatmul.mubr.msk.f32.vlgmr.msra.gmra.mxu1 %vm899_vm3, %v1257_v17  ;;  %v4277_v17 = vsub.s32 2, %v4238_v37  ;;  %v1884_v18 = vrot.slane %v4247_v42, %v4274_v16 }
 0x41e   : > { %3739 = vmatprep.mubr.msk.f32.mxu1 %vm3946_vm1, %v3945_v4  ;;  %3738 = vmatpush3.msra.mxu1 %v484_v19 }
 0x41f   : > { %3747 = vmatprep.subr.mxu1 %v3945_v4 }
 0x49c   : > { %v1330_v21 = vpop.f32.mrf.mxu0 }
 0x49d   : > { %3735 = vmatmul.mubr.msk.f32.vlgmr.msra.gmra.mxu0 %vm899_vm3, %v1330_v21 }
 0x49e   : > { %v3716_v22 = vpop.f32.mrf.mxu0  ;;  %3743 = vmatpush3.msra.mxu0 %v485_v20  ;;  %3744 = vmatprep.mubr.msk.f32.mxu0 %vm3946_vm1, %v3945_v4  ;;  %v1889_v20 = vrot.slane %v4247_v42, %v4277_v17  ;;  %v543_v42 = vld [vmem:[%s4105_s17 + $0x1c0] sm:$0xff] }
 0x49f   : > { %2000 = vmatprep.subr.mxu0 %v536_v58  ;;  %v547_v58 = vld [vmem:[%s4105_s17 + $0x1e0] sm:$0xff] }
 0x4a8   : > { %v1406_v24 = vpop.f32.mrf.mxu1 }
 0x4a9   : > { %3740 = vmatmul.mubr.msk.f32.vlgmr.msra.gmra.mxu1 %vm899_vm3, %v1406_v24  ;;  %v539_v24 = vld [vmem:[%s4105_s17 + $0x1a0] sm:$0xff] }
 0x4aa   : > { %v3721_v25 = vpop.f32.mrf.mxu1  ;;  %3748 = vmatpush3.msra.mxu1 %v486_v23  ;;  %3749 = vmatprep.mubr.msk.f32.mxu1 %vm3946_vm1, %v3945_v4 }
 0x4ab   : > { %2071 = vmatprep.subr.mxu1 %v538_v59  ;;  %v541_v25 = vld [vmem:[%s4105_s17 + $0x1b0] sm:$0xff] }
 0x4ac   : > { %v549_v59 = vld [vmem:[%s4105_s17 + $0x1f0] sm:$0xff] }
 0x4cc   : > { %v1482_v26 = vpop.f32.mrf.mxu0 }
 0x4cd   : > { %3745 = vmatmul.mubr.msk.f32.vlgmr.msra.gmra.mxu0 %vm899_vm3, %v1482_v26  ;;  %v524_v26 = vld [vmem:[%s4105_s17 + $0x128] sm:$0xff] }
 0x4ce   : > { %v3726_v27 = vpop.f32.mrf.mxu0  ;;  %2040 = vmatprep.mubr.f32.mxu0 %v3945_v4 }
 0x4cf   : > { %v526_v27 = vld [vmem:[%s4105_s17 + $0x138] sm:$0xff] }
 0x4dd   : > { %v1558_v28 = vpop.f32.mrf.mxu1 }
 0x4de   : > { %3750 = vmatmul.mubr.msk.f32.vlgmr.msra.gmra.mxu1 %vm899_vm3, %v1558_v28  ;;  %v523_v28 = vld [vmem:[%s4105_s17 + $0x120] sm:$0xff] }
 0x4df   : > { %v3731_v29 = vpop.f32.mrf.mxu1  ;;  %2111 = vmatprep.mubr.f32.mxu1 %v3945_v4  ;;  %2072 = vmatpush1.msra.mxu1 %v537_v60  ;;  %v534_v60 = vld [vmem:[%s4105_s17 + $0x178] sm:$0xff] }
 0x4e0   : > { %2073 = vmatprep.subr.mxu1 %v522_v62  ;;  %v525_v29 = vld [vmem:[%s4105_s17 + $0x130] sm:$0xff] }
 0x4e1   : > { %2074 = vmatpush1.msra.mxu1 %v521_v0  ;;  %v533_v62 = vld [vmem:[%s4105_s17 + $0x170] sm:$0xff]  ;;  %v518_v0 = vld [vmem:[%s4105_s17 + $0xf8] sm:$0xff] }
 0x4e2   : > { %2075 = vmatprep.subr.mxu1 %v506_v2  ;;  %v517_v2 = vld [vmem:[%s4105_s17 + $0xf0] sm:$0xff] }
 0x4e3   : > { %2076 = vmatpush1.msra.mxu1 %v505_v5  ;;  %v502_v5 = vld [vmem:[%s4105_s17 + $0x78] sm:$0xff] }
 0x4e4   : > { %2077 = vmatprep.subr.mxu1 %v490_v7  ;;  %v501_v7 = vld [vmem:[%s4105_s17 + $0x70] sm:$0xff] }
 0x4e5   : > { %2078 = vmatpush1.msra.mxu1 %v489_v10  ;;  %v616_v10 = vld [vmem:[%s4117_s11 + $0x1f8] sm:$0xff] }
 0x4e6   : > { %2213 = vmatprep.subr.mxu1 %v542_v12  ;;  %v600_v12 = vld [vmem:[%s4117_s11 + $0x178] sm:$0xff] }
 0x55d   : > { %v1631_v30 = vpop.f32.mrf.mxu0 }
 0x55e   : > { %v1854_v40 = vsel %vm816_vm2, %v1631_v30, 0.0  ;;  %v508_v30 = vld [vmem:[%s4105_s17 + $0xa8] sm:$0xff] }
 0x55f   : > { %v3736_v31 = vpop.f32.mrf.mxu0 }
 0x560   : > { %v510_v31 = vld [vmem:[%s4105_s17 + $0xb8] sm:$0xff] }
 0x569   : > { %v1704_v32 = vpop.f32.mrf.mxu1 }
 0x56a   : > { %v1855_v38 = vsel %vm816_vm2, %v1704_v32, 0.0  ;;  %v507_v32 = vld [vmem:[%s4105_s17 + $0xa0] sm:$0xff] }
 0x56b   : > { %v3741_v33 = vpop.f32.mrf.mxu1  ;;  %v1856_v43 = vadd.f32 %v1855_v38, %v1854_v40  ;;  %v493_v38 = vld [vmem:[%s4105_s17 + $0x30] sm:$0xff]  ;;  %v544_v40 = vld [vmem:[%s4105_s17 + $0x1c8] sm:$0xff] }
 0x56c   : > { %v509_v33 = vld [vmem:[%s4105_s17 + $0xb0] sm:$0xff] }
 0x58d   : > { %v1777_v34 = vpop.f32.mrf.mxu0 }
 0x58e   : > { %v1857_v41 = vsel %vm816_vm2, %v1777_v34, 0.0  ;;  %v492_v34 = vld [vmem:[%s4105_s17 + $0x28] sm:$0xff] }
 0x58f   : > { %v3746_v35 = vpop.f32.mrf.mxu0  ;;  %v1858_v44 = vadd.f32 %v1857_v41, %v1856_v43  ;;  %v546_v41 = vld [vmem:[%s4105_s17 + $0x1d8] sm:$0xff]  ;;  %v545_v43 = vld [vmem:[%s4105_s17 + $0x1d0] sm:$0xff] }
 0x590   : > { %v494_v35 = vld [vmem:[%s4105_s17 + $0x38] sm:$0xff] }
 0x59e   : > { %v1850_v45 = vpop.f32.mrf.mxu1 }
 0x59f   : > { %v1859_v47 = vsel %vm816_vm2, %v1850_v45, 0.0  ;;  %v530_v45 = vld [vmem:[%s4105_s17 + $0x158] sm:$0xff] }
 0x5a0   : > { %v1860_v48 = vadd.f32 %v1859_v47, %v1858_v44  ;;  %v3751_v49 = vpop.f32.mrf.mxu1  ;;  %v528_v44 = vld [vmem:[%s4105_s17 + $0x148] sm:$0xff]  ;;  %v529_v47 = vld [vmem:[%s4105_s17 + $0x150] sm:$0xff] }
 0x5a1   : > { %v514_v49 = vld [vmem:[%s4105_s17 + $0xd8] sm:$0xff] }
 0x5a2   : > { %v1865_v50 = vadd.f32 %v1864_v46, %v1860_v48  ;;  %v527_v46 = vld [vmem:[%s4105_s17 + $0x140] sm:$0xff]  ;;  %v512_v48 = vld [vmem:[%s4105_s17 + $0xc8] sm:$0xff] }
 0x5a4   : > { %v1866_v51 = vadd.f32 %v1865_v50, %v4142_v8  ;;  %v535_v8 = vld [vmem:[%s4105_s17 + $0x180] sm:$0xff] }
 0x5a5   : > { %2001 = vmatpush1.msra.mxu0 %v535_v8  ;;  %v511_v50 = vld [vmem:[%s4105_s17 + $0xc0] sm:$0xff]  ;;  %v532_v8 = vld [vmem:[%s4105_s17 + $0x168] sm:$0xff] }
 0x5a6   : > { %v1867_v52 = vsel %vm816_vm2, %v1866_v51, 0.0  ;;  %2002 = vmatprep.subr.mxu0 %v520_v61  ;;  %v531_v61 = vld [vmem:[%s4105_s17 + $0x160] sm:$0xff] }
 0x5a7   : > { %1868 = vadd.xlane.f32.xlu1 %v1867_v52  ;;  %2003 = vmatpush1.msra.mxu0 %v519_v63  ;;  %v496_v52 = vld [vmem:[%s4105_s17 + $0x48] sm:$0xff] }
 0x5a8   : > { %2004 = vmatprep.subr.mxu0 %v504_v1  ;;  %v516_v63 = vld [vmem:[%s4105_s17 + $0xe8] sm:$0xff]  ;;  %v515_v1 = vld [vmem:[%s4105_s17 + $0xe0] sm:$0xff] }
 0x5a9   : > { %2005 = vmatpush1.msra.mxu0 %v503_v3  ;;  %v500_v3 = vld [vmem:[%s4105_s17 + $0x68] sm:$0xff] }
 0x5aa   : > { %2006 = vmatprep.subr.mxu0 %v488_v6  ;;  %v499_v6 = vld [vmem:[%s4105_s17 + $0x60] sm:$0xff] }
 0x5ab   : > { %2007 = vmatpush1.msra.mxu0 %v487_v9  ;;  %v584_v9 = vld [vmem:[%s4117_s11 + $0xf8] sm:$0xff] }
 0x5ac   : > { %2142 = vmatprep.subr.mxu0 %v540_v11  ;;  %v568_v11 = vld [vmem:[%s4117_s11 + $0x78] sm:$0xff] }
 0x630   : > { %v1869_v53 = vpop.xlane.xlu1 %1868 }
 0x631   : > { %v1871_v54 = vmul.f32 0.03125, %v1869_v53  ;;  %v498_v53 = vld [vmem:[%s4105_s17 + $0x58] sm:$0xff] }
 0x633   : > { %v1872_v55 = vsub.f32 %v1866_v51, %v1871_v54  ;;  %v513_v51 = vld [vmem:[%s4105_s17 + $0xd0] sm:$0xff]  ;;  %v495_v54 = vld [vmem:[%s4105_s17 + $0x40] sm:$0xff] }
 0x635   : > { %v1873_v56 = vmul.f32 %v1872_v55, %v1872_v55 }
 0x637   : > { %v1874_v57 = vsel %vm816_vm2, %v1873_v56, 0.0  ;;  %v548_v56 = vld [vmem:[%s4105_s17 + $0x1e8] sm:$0xff] }
 0x638   : > { %1875 = vadd.xlane.f32.xlu0 %v1874_v57  ;;  %v550_v57 = vld [vmem:[%s4105_s17 + $0x1f8] sm:$0xff] }
 0x6c1   : > { %v1876_v13 = vpop.xlane.xlu0 %1875 }
 0x6c2   : > { %v1877_v14 = vmul.f32 0.03125, %v1876_v13  ;;  %v583_v13 = vld [vmem:[%s4117_s11 + $0xf0] sm:$0xff] }
 0x6c4   : > { %v1878_v15 = vadd.f32 1e-05, %v1877_v14  ;;  %v615_v14 = vld [vmem:[%s4117_s11 + $0x1f0] sm:$0xff] }
 0x6c6   : > { %3846 = vrsqrt.f32 %v1878_v15  ;;  %v567_v15 = vld [vmem:[%s4117_s11 + $0x70] sm:$0xff] }
 0x6d3   : > { %v3847_v19 = vpop.eup %3846 }
 0x6d4   : > { %v1880_v21 = vmul.f32 %v3847_v19, %v1872_v55  ;;  %v497_v55 = vld [vmem:[%s4105_s17 + $0x50] sm:$0xff]  ;;  %v614_v19 = vld [vmem:[%s4117_s11 + $0x1e8] sm:$0xff] }
 0x6d6   : > { %v1885_v22 = vmul.f32 %v1884_v18, %v1880_v21  ;;  %v599_v18 = vld [vmem:[%s4117_s11 + $0x170] sm:$0xff]  ;;  %v598_v21 = vld [vmem:[%s4117_s11 + $0x168] sm:$0xff] }
 0x6d8   : > { %v4283_v23 = vadd.f32 %v1889_v20, %v1885_v22  ;;  %v566_v20 = vld [vmem:[%s4117_s11 + $0x68] sm:$0xff]  ;;  %v581_v22 = vld [vmem:[%s4117_s11 + $0xe0] sm:$0xff] }
 0x6da   : > { %3355 = vmatmul.mubr.msk.f32.vlgmr.msra.gmra.mxu0 %vm816_vm2, %v4283_v23  ;;  %3356 = vmatmul.mubr.msk.f32.vlgmr.msra.gmra.mxu1 %vm816_vm2, %v4283_v23 }
 0x6db   : > { %2143 = vmatpush1.msra.mxu0 %v539_v24  ;;  %2214 = vmatpush1.msra.mxu1 %v541_v25  ;;  %v613_v24 = vld [vmem:[%s4117_s11 + $0x1e0] sm:$0xff] }
 0x6dc   : > { %2144 = vmatprep.subr.mxu0 %v524_v26  ;;  %2215 = vmatprep.subr.mxu1 %v526_v27  ;;  %v565_v25 = vld [vmem:[%s4117_s11 + $0x60] sm:$0xff]  ;;  %v580_v27 = vld [vmem:[%s4117_s11 + $0xd8] sm:$0xff] }
 0x6dd   : > { %2145 = vmatpush1.msra.mxu0 %v523_v28  ;;  %2216 = vmatpush1.msra.mxu1 %v525_v29  ;;  %v597_v26 = vld [vmem:[%s4117_s11 + $0x160] sm:$0xff]  ;;  %v612_v28 = vld [vmem:[%s4117_s11 + $0x1d8] sm:$0xff] }
 0x6de   : > { %2146 = vmatprep.subr.mxu0 %v508_v30  ;;  %2217 = vmatprep.subr.mxu1 %v510_v31  ;;  %v564_v29 = vld [vmem:[%s4117_s11 + $0x58] sm:$0xff]  ;;  %v579_v31 = vld [vmem:[%s4117_s11 + $0xd0] sm:$0xff] }
 0x6df   : > { %2147 = vmatpush1.msra.mxu0 %v507_v32  ;;  %2218 = vmatpush1.msra.mxu1 %v509_v33  ;;  %v596_v30 = vld [vmem:[%s4117_s11 + $0x158] sm:$0xff]  ;;  %v611_v32 = vld [vmem:[%s4117_s11 + $0x1d0] sm:$0xff] }
 0x6e0   : > { %2148 = vmatprep.subr.mxu0 %v492_v34  ;;  %2219 = vmatprep.subr.mxu1 %v494_v35  ;;  %v563_v33 = vld [vmem:[%s4117_s11 + $0x50] sm:$0xff]  ;;  %v578_v35 = vld [vmem:[%s4117_s11 + $0xc8] sm:$0xff] }
 0x6e1   : > { %2149 = vmatpush1.msra.mxu0 %v491_v36  ;;  %2182 = vmatprep.mubr.f32.mxu0 %v3945_v4  ;;  %v595_v34 = vld [vmem:[%s4117_s11 + $0x150] sm:$0xff]  ;;  %v610_v36 = vld [vmem:[%s4117_s11 + $0x1c8] sm:$0xff] }
 0x6e2   : > { %2220 = vmatpush1.msra.mxu1 %v493_v38  ;;  %2253 = vmatprep.mubr.f32.mxu1 %v3945_v4  ;;  %v562_v38 = vld [vmem:[%s4117_s11 + $0x48] sm:$0xff] }
 0x6e3   : > { %3357 = vmatmul.mubr.msk.f32.vlgmr.msra.gmra.mxu0 %vm816_vm2, %v4283_v23  ;;  %3358 = vmatmul.mubr.msk.f32.vlgmr.msra.gmra.mxu1 %vm816_vm2, %v4283_v23 }
 0x6e4   : > { %2284 = vmatprep.subr.mxu0 %v544_v40  ;;  %2355 = vmatprep.subr.mxu1 %v546_v41  ;;  %v594_v40 = vld [vmem:[%s4117_s11 + $0x148] sm:$0xff]  ;;  %v577_v41 = vld [vmem:[%s4117_s11 + $0xc0] sm:$0xff] }
 0x6e5   : > { %2285 = vmatpush1.msra.mxu0 %v543_v42  ;;  %2356 = vmatpush1.msra.mxu1 %v545_v43  ;;  %v609_v42 = vld [vmem:[%s4117_s11 + $0x1c0] sm:$0xff] }
 0x6e6   : > { %2286 = vmatprep.subr.mxu0 %v528_v44  ;;  %2357 = vmatprep.subr.mxu1 %v530_v45  ;;  %v561_v43 = vld [vmem:[%s4117_s11 + $0x40] sm:$0xff]  ;;  %v576_v45 = vld [vmem:[%s4117_s11 + $0xb8] sm:$0xff] }
 0x6e7   : > { %2287 = vmatpush1.msra.mxu0 %v527_v46  ;;  %2358 = vmatpush1.msra.mxu1 %v529_v47  ;;  %v593_v44 = vld [vmem:[%s4117_s11 + $0x140] sm:$0xff]  ;;  %v608_v46 = vld [vmem:[%s4117_s11 + $0x1b8] sm:$0xff] }
 0x6e8   : > { %2288 = vmatprep.subr.mxu0 %v512_v48  ;;  %2359 = vmatprep.subr.mxu1 %v514_v49  ;;  %v560_v47 = vld [vmem:[%s4117_s11 + $0x38] sm:$0xff]  ;;  %v575_v49 = vld [vmem:[%s4117_s11 + $0xb0] sm:$0xff] }
 0x6e9   : > { %2289 = vmatpush1.msra.mxu0 %v511_v50  ;;  %2360 = vmatpush1.msra.mxu1 %v513_v51  ;;  %v592_v48 = vld [vmem:[%s4117_s11 + $0x138] sm:$0xff]  ;;  %v607_v50 = vld [vmem:[%s4117_s11 + $0x1b0] sm:$0xff] }
 0x6ea   : > { %2290 = vmatprep.subr.mxu0 %v496_v52  ;;  %2361 = vmatprep.subr.mxu1 %v498_v53  ;;  %v559_v51 = vld [vmem:[%s4117_s11 + $0x30] sm:$0xff]  ;;  %v574_v53 = vld [vmem:[%s4117_s11 + $0xa8] sm:$0xff] }
 0x6eb   : > { %2291 = vmatpush1.msra.mxu0 %v495_v54  ;;  %2324 = vmatprep.mubr.f32.mxu0 %v3945_v4  ;;  %v591_v52 = vld [vmem:[%s4117_s11 + $0x130] sm:$0xff]  ;;  %v606_v54 = vld [vmem:[%s4117_s11 + $0x1a8] sm:$0xff] }
 0x6ec   : > { %2362 = vmatpush1.msra.mxu1 %v497_v55  ;;  %2395 = vmatprep.mubr.f32.mxu1 %v3945_v4  ;;  %v558_v55 = vld [vmem:[%s4117_s11 + $0x28] sm:$0xff] }
 0x6ed   : > { %3359 = vmatmul.mubr.msk.f32.vlgmr.msra.gmra.mxu0 %vm816_vm2, %v4283_v23  ;;  %3360 = vmatmul.mubr.msk.f32.vlgmr.msra.gmra.mxu1 %vm816_vm2, %v4283_v23 }
 0x6ee   : > { %2426 = vmatprep.subr.mxu0 %v548_v56  ;;  %2497 = vmatprep.subr.mxu1 %v550_v57  ;;  %v590_v56 = vld [vmem:[%s4117_s11 + $0x128] sm:$0xff]  ;;  %v573_v57 = vld [vmem:[%s4117_s11 + $0xa0] sm:$0xff] }
 0x6ef   : > { %2427 = vmatpush1.msra.mxu0 %v547_v58  ;;  %2498 = vmatpush1.msra.mxu1 %v549_v59  ;;  %v605_v58 = vld [vmem:[%s4117_s11 + $0x1a0] sm:$0xff] }
 0x6f0   : > { %2428 = vmatprep.subr.mxu0 %v532_v8  ;;  %2499 = vmatprep.subr.mxu1 %v534_v60  ;;  %v557_v59 = vld [vmem:[%s4117_s11 + $0x20] sm:$0xff]  ;;  %v572_v60 = vld [vmem:[%s4117_s11 + $0x98] sm:$0xff] }
 0x6f1   : > { %2429 = vmatpush1.msra.mxu0 %v531_v61  ;;  %2500 = vmatpush1.msra.mxu1 %v533_v62  ;;  %v589_v8 = vld [vmem:[%s4117_s11 + $0x120] sm:$0xff]  ;;  %v604_v61 = vld [vmem:[%s4117_s11 + $0x198] sm:$0xff] }
 0x6f2   : > { %2430 = vmatprep.subr.mxu0 %v516_v63  ;;  %2501 = vmatprep.subr.mxu1 %v518_v0  ;;  %v556_v62 = vld [vmem:[%s4117_s11 + $0x18] sm:$0xff]  ;;  %v571_v0 = vld [vmem:[%s4117_s11 + $0x90] sm:$0xff] }
 0x6f3   : > { %2431 = vmatpush1.msra.mxu0 %v515_v1  ;;  %2502 = vmatpush1.msra.mxu1 %v517_v2  ;;  %v588_v63 = vld [vmem:[%s4117_s11 + $0x118] sm:$0xff]  ;;  %v603_v1 = vld [vmem:[%s4117_s11 + $0x190] sm:$0xff] }
 0x6f4   : > { %2432 = vmatprep.subr.mxu0 %v500_v3  ;;  %2503 = vmatprep.subr.mxu1 %v502_v5  ;;  %v555_v2 = vld [vmem:[%s4117_s11 + $0x10] sm:$0xff]  ;;  %v570_v5 = vld [vmem:[%s4117_s11 + $0x88] sm:$0xff] }
 0x6f5   : > { %2433 = vmatpush1.msra.mxu0 %v499_v6  ;;  %2466 = vmatprep.mubr.f32.mxu0 %v3945_v4  ;;  %v587_v3 = vld [vmem:[%s4117_s11 + $0x110] sm:$0xff]  ;;  %v602_v6 = vld [vmem:[%s4117_s11 + $0x188] sm:$0xff] }
 0x6f6   : > { %2504 = vmatpush1.msra.mxu1 %v501_v7  ;;  %2537 = vmatprep.mubr.f32.mxu1 %v3945_v4  ;;  %v582_v4 = vld [vmem:[%s4117_s11 + $0xe8] sm:$0xff] }
 0x6f7   : > { %3361 = vmatmul.mubr.msk.f32.vlgmr.msra.gmra.mxu0 %vm816_vm2, %v4283_v23  ;;  %3362 = vmatmul.mubr.msk.f32.vlgmr.msra.gmra.mxu1 %vm816_vm2, %v4283_v23  ;;  %v554_v7 = vld [vmem:[%s4117_s11 + $0x8] sm:$0xff] }
 0x6f8   : > { %3401 = vmatprep.subr.mxu0 %v584_v9  ;;  %3436 = vmatprep.subr.mxu1 %v616_v10  ;;  %v586_v9 = vld [vmem:[%s4117_s11 + $0x108] sm:$0xff]  ;;  %v569_v10 = vld [vmem:[%s4117_s11 + $0x80] sm:$0xff] }
 0x6f9   : > { %3402 = vmatpush3.msra.mxu0 %v568_v11  ;;  %3437 = vmatpush3.msra.mxu1 %v600_v12  ;;  %v601_v11 = vld [vmem:[%s4117_s11 + $0x180] sm:$0xff] }
 0x6fa   : > { %3403 = vmatprep.subr.mxu0 %v583_v13  ;;  %3438 = vmatprep.subr.mxu1 %v615_v14  ;;  %v553_v12 = vld [vmem:[%s4117_s11] sm:$0xff]  ;;  %v648_v14 = vld [vmem:[%s4117_s11 + $0x2f8] sm:$0xff] }
 0x6fb   : > { %3404 = vmatpush3.msra.mxu0 %v567_v15  ;;  %3439 = vmatpush3.msra.mxu1 %v599_v18  ;;  %v585_v13 = vld [vmem:[%s4117_s11 + $0x100] sm:$0xff]  ;;  %v680_v15 = vld [vmem:[%s4117_s11 + $0x3f8] sm:$0xff]  ;;  %v4420_v18 = vsub.s32 4, %v4238_v37 }
 0x6fc   : > { %3405 = vmatprep.subr.mxu0 %v582_v4  ;;  %3440 = vmatprep.subr.mxu1 %v614_v19  ;;  %v4423_v4 = vld [vmem:[%s4111_s26 + $0x8] sm:$0xff] }
 0x6fd   : > { %3406 = vmatpush3.msra.mxu0 %v566_v20  ;;  %3441 = vmatpush3.msra.mxu1 %v598_v21  ;;  %v1944_v19 = vrot.slane %v4423_v4, %v4420_v18  ;;  %v1919_v20 = vsub.s32 6, %v4238_v37 }
 0x6fe   : > { %3407 = vmatprep.subr.mxu0 %v581_v22  ;;  %3442 = vmatprep.subr.mxu1 %v613_v24  ;;  %v4434_v22 = vld [vmem:[%s4111_s26] sm:$0xff]  ;;  %v4437_v24 = vsub.s32 3, %v4238_v37 }
 0x6ff   : > { %3408 = vmatpush3.msra.mxu0 %v565_v25  ;;  %3443 = vmatpush3.msra.mxu1 %v597_v26  ;;  %v4431_v21 = vrot.slane %v4423_v4, %v1919_v20  ;;  %v1896_v25 = vrot.slane %v4434_v22, %v4242_v39  ;;  %v1904_v26 = vrot.slane %v4434_v22, %v4277_v17 }
 0x700   : > { %3409 = vmatprep.subr.mxu0 %v580_v27  ;;  %3444 = vmatprep.subr.mxu1 %v612_v28  ;;  %v1900_v27 = vrot.slane %v4434_v22, %v4274_v16  ;;  %v1908_v28 = vrot.slane %v4434_v22, %v4437_v24 }
 0x701   : > { %3410 = vmatpush3.msra.mxu0 %v564_v29  ;;  %3445 = vmatpush3.msra.mxu1 %v596_v30 }
 0x702   : > { %3411 = vmatprep.subr.mxu0 %v579_v31  ;;  %3446 = vmatprep.subr.mxu1 %v611_v32 }
 0x703   : > { %3412 = vmatpush3.msra.mxu0 %v563_v33  ;;  %3447 = vmatpush3.msra.mxu1 %v595_v34 }
 0x704   : > { %3413 = vmatprep.subr.mxu0 %v578_v35  ;;  %3448 = vmatprep.subr.mxu1 %v610_v36 }
 0x705   : > { %3414 = vmatpush3.msra.mxu0 %v562_v38  ;;  %3449 = vmatpush3.msra.mxu1 %v594_v40  ;;  %v4448_v38 = vsub.s32 5, %v4238_v37  ;;  %v1923_v40 = vsub.s32 7, %v4238_v37  ;;  %v697_v37 = vld [vmem:[%s4117_s11 + $0x480] sm:$0xff] }
 0x706   : > { %3415 = vmatprep.subr.mxu0 %v577_v41  ;;  %3450 = vmatprep.subr.mxu1 %v609_v42 }
 0x707   : > { %3416 = vmatpush3.msra.mxu0 %v561_v43  ;;  %3451 = vmatpush3.msra.mxu1 %v593_v44 }
 0x708   : > { %3417 = vmatprep.subr.mxu0 %v576_v45  ;;  %3452 = vmatprep.subr.mxu1 %v608_v46  ;;  %v632_v45 = vld [vmem:[%s4117_s11 + $0x278] sm:$0xff] }
 0x709   : > { %3418 = vmatpush3.msra.mxu0 %v560_v47  ;;  %3453 = vmatpush3.msra.mxu1 %v592_v48  ;;  %v664_v46 = vld [vmem:[%s4117_s11 + $0x378] sm:$0xff]  ;;  %v647_v47 = vld [vmem:[%s4117_s11 + $0x2f0] sm:$0xff] }
 0x70a   : > { %3419 = vmatprep.subr.mxu0 %v575_v49  ;;  %3454 = vmatprep.subr.mxu1 %v607_v50  ;;  %v679_v48 = vld [vmem:[%s4117_s11 + $0x3f0] sm:$0xff]  ;;  %v1916_v49 = vrot.slane %v4434_v22, %v4448_v38  ;;  %v1924_v50 = vrot.slane %v4434_v22, %v1923_v40 }
 0x70b   : > { %3420 = vmatpush3.msra.mxu0 %v559_v51  ;;  %3455 = vmatpush3.msra.mxu1 %v591_v52  ;;  %v631_v51 = vld [vmem:[%s4117_s11 + $0x270] sm:$0xff] }
 0x70c   : > { %3421 = vmatprep.subr.mxu0 %v574_v53  ;;  %3456 = vmatprep.subr.mxu1 %v606_v54  ;;  %v663_v52 = vld [vmem:[%s4117_s11 + $0x370] sm:$0xff] }
 0x70d   : > { %3422 = vmatpush3.msra.mxu0 %v558_v55  ;;  %3457 = vmatpush3.msra.mxu1 %v590_v56  ;;  %v646_v55 = vld [vmem:[%s4117_s11 + $0x2e8] sm:$0xff] }
 0x70e   : > { %3423 = vmatprep.subr.mxu0 %v573_v57  ;;  %3458 = vmatprep.subr.mxu1 %v605_v58  ;;  %v678_v56 = vld [vmem:[%s4117_s11 + $0x3e8] sm:$0xff] }
 0x70f   : > { %3424 = vmatpush3.msra.mxu0 %v557_v59  ;;  %3459 = vmatpush3.msra.mxu1 %v589_v8  ;;  %v630_v57 = vld [vmem:[%s4117_s11 + $0x268] sm:$0xff] }
 0x710   : > { %3425 = vmatprep.subr.mxu0 %v572_v60  ;;  %3460 = vmatprep.subr.mxu1 %v604_v61  ;;  %v662_v58 = vld [vmem:[%s4117_s11 + $0x368] sm:$0xff]  ;;  %v645_v60 = vld [vmem:[%s4117_s11 + $0x2e0] sm:$0xff] }
 0x711   : > { %3426 = vmatpush3.msra.mxu0 %v556_v62  ;;  %3461 = vmatpush3.msra.mxu1 %v588_v63  ;;  %v677_v61 = vld [vmem:[%s4117_s11 + $0x3e0] sm:$0xff] }
 0x712   : > { %3427 = vmatprep.subr.mxu0 %v571_v0  ;;  %3462 = vmatprep.subr.mxu1 %v603_v1  ;;  %v629_v0 = vld [vmem:[%s4117_s11 + $0x260] sm:$0xff] }
 0x713   : > { %3428 = vmatpush3.msra.mxu0 %v555_v2  ;;  %3463 = vmatpush3.msra.mxu1 %v587_v3  ;;  %v661_v1 = vld [vmem:[%s4117_s11 + $0x360] sm:$0xff] }
 0x714   : > { %3429 = vmatprep.subr.mxu0 %v570_v5  ;;  %3464 = vmatprep.subr.mxu1 %v602_v6  ;;  %v644_v5 = vld [vmem:[%s4117_s11 + $0x2d8] sm:$0xff] }
 0x715   : > { %3430 = vmatpush3.msra.mxu0 %v554_v7  ;;  %3465 = vmatpush3.msra.mxu1 %v586_v9  ;;  %v676_v6 = vld [vmem:[%s4117_s11 + $0x3d8] sm:$0xff] }
 0x716   : > { %3431 = vmatprep.subr.mxu0 %v569_v10  ;;  %3466 = vmatprep.subr.mxu1 %v601_v11  ;;  %v628_v7 = vld [vmem:[%s4117_s11 + $0x258] sm:$0xff]  ;;  %v643_v10 = vld [vmem:[%s4117_s11 + $0x2d0] sm:$0xff] }
 0x717   : > { %3432 = vmatpush3.msra.mxu0 %v553_v12  ;;  %3467 = vmatpush3.msra.mxu1 %v585_v13  ;;  %v660_v9 = vld [vmem:[%s4117_s11 + $0x358] sm:$0xff]  ;;  %v675_v11 = vld [vmem:[%s4117_s11 + $0x3d0] sm:$0xff] }
 0x718   : > { %3471 = vmatprep.subr.mxu0 %v648_v14  ;;  %3506 = vmatprep.subr.mxu1 %v680_v15  ;;  %v627_v12 = vld [vmem:[%s4117_s11 + $0x250] sm:$0xff]  ;;  %v642_v14 = vld [vmem:[%s4117_s11 + $0x2c8] sm:$0xff] }
 0x719   : > { %v659_v13 = vld [vmem:[%s4117_s11 + $0x350] sm:$0xff]  ;;  %v674_v15 = vld [vmem:[%s4117_s11 + $0x3c8] sm:$0xff] }
 0x79a   : > { %v2042_v29 = vpop.f32.mrf.mxu0  ;;  %v2113_v30 = vpop.f32.mrf.mxu1 }
 0x79b   : > { %v2043_v31 = vadd.f32 %v2042_v29, %v1896_v25  ;;  %v2114_v32 = vadd.f32 %v2113_v30, %v1904_v26  ;;  %v626_v25 = vld [vmem:[%s4117_s11 + $0x248] sm:$0xff]  ;;  %v625_v29 = vld [vmem:[%s4117_s11 + $0x240] sm:$0xff] }
 0x79c   : > { %v2044_v33 = vpop.f32.mrf.mxu0  ;;  %v2115_v34 = vpop.f32.mrf.mxu1  ;;  %v658_v26 = vld [vmem:[%s4117_s11 + $0x348] sm:$0xff]  ;;  %v657_v30 = vld [vmem:[%s4117_s11 + $0x340] sm:$0xff] }
 0x79d   : > { %v2045_v35 = vadd.f32 %v2044_v33, %v1900_v27  ;;  %v2116_v36 = vadd.f32 %v2115_v34, %v1908_v28  ;;  %v2544_v43 = vmax.f32 %v2043_v31, 0.0  ;;  %v2546_v44 = vmax.f32 %v2114_v32, 0.0  ;;  %v641_v27 = vld [vmem:[%s4117_s11 + $0x2c0] sm:$0xff]  ;;  %v640_v31 = vld [vmem:[%s4117_s11 + $0x2b8] sm:$0xff] }
 0x79e   : > { %v673_v28 = vld [vmem:[%s4117_s11 + $0x3c0] sm:$0xff]  ;;  %v672_v32 = vld [vmem:[%s4117_s11 + $0x3b8] sm:$0xff] }
 0x79f   : > { %v2545_v41 = vmax.f32 %v2045_v35, 0.0  ;;  %v2547_v42 = vmax.f32 %v2116_v36, 0.0  ;;  %v624_v33 = vld [vmem:[%s4117_s11 + $0x238] sm:$0xff]  ;;  %v639_v35 = vld [vmem:[%s4117_s11 + $0x2b0] sm:$0xff] }
 0x7a0   : > { %v656_v34 = vld [vmem:[%s4117_s11 + $0x338] sm:$0xff]  ;;  %v671_v36 = vld [vmem:[%s4117_s11 + $0x3b0] sm:$0xff] }
 0x7a1   : > { %2628 = vmatprep.mubr.f32.mxu0 %v2545_v41  ;;  %2698 = vmatprep.mubr.f32.mxu1 %v2547_v42  ;;  %v623_v41 = vld [vmem:[%s4117_s11 + $0x230] sm:$0xff] }
 0x7a2   : > { %2629 = vmatmul.mubr.f32.vlgmr.msra.gmra.mxu0 %v2544_v43  ;;  %2699 = vmatmul.mubr.f32.vlgmr.msra.gmra.mxu1 %v2546_v44  ;;  %v655_v42 = vld [vmem:[%s4117_s11 + $0x330] sm:$0xff]  ;;  %v638_v43 = vld [vmem:[%s4117_s11 + $0x2a8] sm:$0xff] }
 0x7a3   : > { %v4462_v53 = vpop.f32.mrf.mxu0  ;;  %v4464_v54 = vpop.f32.mrf.mxu1  ;;  %3472 = vmatpush3.msra.mxu0 %v632_v45  ;;  %3507 = vmatpush3.msra.mxu1 %v664_v46  ;;  %v670_v44 = vld [vmem:[%s4117_s11 + $0x3a8] sm:$0xff] }
 0x7a4   : > { %3473 = vmatprep.subr.mxu0 %v647_v47  ;;  %3508 = vmatprep.subr.mxu1 %v679_v48  ;;  %v622_v45 = vld [vmem:[%s4117_s11 + $0x228] sm:$0xff]  ;;  %v637_v47 = vld [vmem:[%s4117_s11 + $0x2a0] sm:$0xff] }
 0x7a5   : > { %v2186_v59 = vpop.f32.mrf.mxu0  ;;  %v2257_v8 = vpop.f32.mrf.mxu1  ;;  %3474 = vmatpush3.msra.mxu0 %v631_v51  ;;  %3509 = vmatpush3.msra.mxu1 %v663_v52  ;;  %v654_v46 = vld [vmem:[%s4117_s11 + $0x328] sm:$0xff]  ;;  %v669_v48 = vld [vmem:[%s4117_s11 + $0x3a0] sm:$0xff]  ;;  %v636_v52 = vld [vmem:[%s4117_s11 + $0x298] sm:$0xff] }
 0x7a6   : > { %v2187_v62 = vadd.f32 %v2186_v59, %v1916_v49  ;;  %v2258_v63 = vadd.f32 %v2257_v8, %v1924_v50  ;;  %3475 = vmatprep.subr.mxu0 %v646_v55  ;;  %3510 = vmatprep.subr.mxu1 %v678_v56  ;;  %v621_v49 = vld [vmem:[%s4117_s11 + $0x220] sm:$0xff]  ;;  %v668_v55 = vld [vmem:[%s4117_s11 + $0x398] sm:$0xff]  ;;  %v1912_v56 = vrot.slane %v4434_v22, %v4420_v18 }
 0x7a7   : > { %3476 = vmatpush3.msra.mxu0 %v630_v57  ;;  %3511 = vmatpush3.msra.mxu1 %v662_v58  ;;  %v653_v50 = vld [vmem:[%s4117_s11 + $0x320] sm:$0xff]  ;;  %v1920_v57 = vrot.slane %v4434_v22, %v1919_v20  ;;  %v620_v59 = vld [vmem:[%s4117_s11 + $0x218] sm:$0xff]  ;;  %v619_v20 = vld [vmem:[%s4117_s11 + $0x210] sm:$0xff] }
 0x7a8   : > { %v2549_v2 = vmax.f32 %v2187_v62, 0.0  ;;  %v2551_v3 = vmax.f32 %v2258_v63, 0.0  ;;  %3477 = vmatprep.subr.mxu0 %v645_v60  ;;  %3512 = vmatprep.subr.mxu1 %v677_v61  ;;  %v652_v8 = vld [vmem:[%s4117_s11 + $0x318] sm:$0xff]  ;;  %v635_v60 = vld [vmem:[%s4117_s11 + $0x290] sm:$0xff]  ;;  %v1932_v62 = vrot.slane %v4423_v4, %v4274_v16  ;;  %v2185_v16 = vadd.f32 %v4462_v53, %v1912_v56 }
 0x7a9   : > { %3478 = vmatpush3.msra.mxu0 %v629_v0  ;;  %3513 = vmatpush3.msra.mxu1 %v661_v1  ;;  %v667_v61 = vld [vmem:[%s4117_s11 + $0x390] sm:$0xff]  ;;  %v1940_v0 = vrot.slane %v4423_v4, %v4437_v24  ;;  %v634_v1 = vld [vmem:[%s4117_s11 + $0x288] sm:$0xff] }
 0x7aa   : > { %2768 = vmatprep.mubr.f32.mxu0 %v2549_v2  ;;  %2838 = vmatprep.mubr.f32.mxu1 %v2551_v3  ;;  %v651_v22 = vld [vmem:[%s4117_s11 + $0x310] sm:$0xff]  ;;  %v666_v2 = vld [vmem:[%s4117_s11 + $0x388] sm:$0xff]  ;;  %v2256_v3 = vadd.f32 %v4464_v54, %v1920_v57  ;;  %v2548_v54 = vmax.f32 %v2185_v16, 0.0 }
 0x7ab   : > { %3479 = vmatprep.subr.mxu0 %v644_v5  ;;  %3514 = vmatprep.subr.mxu1 %v676_v6  ;;  %v618_v6 = vld [vmem:[%s4117_s11 + $0x208] sm:$0xff]  ;;  %v723_v56 = vld [vmem:[%s4117_s11 + $0x550] sm:$0xff] }
 0x7ac   : > { %3480 = vmatpush3.msra.mxu0 %v628_v7  ;;  %3515 = vmatpush3.msra.mxu1 %v660_v9  ;;  %v650_v7 = vld [vmem:[%s4117_s11 + $0x308] sm:$0xff]  ;;  %v633_v9 = vld [vmem:[%s4117_s11 + $0x280] sm:$0xff]  ;;  %v703_v16 = vld [vmem:[%s4117_s11 + $0x4b0] sm:$0xff] }
 0x7ad   : > { %3481 = vmatprep.subr.mxu0 %v643_v10  ;;  %3516 = vmatprep.subr.mxu1 %v675_v11  ;;  %v4506_v51 = vpop.f32.mrf.mxu0  ;;  %v4515_v58 = vpop.f32.mrf.mxu1  ;;  %v665_v10 = vld [vmem:[%s4117_s11 + $0x380] sm:$0xff]  ;;  %v706_v57 = vld [vmem:[%s4117_s11 + $0x4c8] sm:$0xff] }
 0x7ae   : > { %3482 = vmatpush3.msra.mxu0 %v627_v12  ;;  %3517 = vmatpush3.msra.mxu1 %v659_v13  ;;  %v617_v12 = vld [vmem:[%s4117_s11 + $0x200] sm:$0xff] }
 0x7af   : > { %3483 = vmatprep.subr.mxu0 %v642_v14  ;;  %3518 = vmatprep.subr.mxu1 %v674_v15  ;;  %v2328_v63 = vpop.f32.mrf.mxu0  ;;  %v2399_v5 = vpop.f32.mrf.mxu1  ;;  %v649_v13 = vld [vmem:[%s4117_s11 + $0x300] sm:$0xff]  ;;  %v2550_v14 = vmax.f32 %v2256_v3, 0.0  ;;  %v712_v15 = vld [vmem:[%s4117_s11 + $0x4f8] sm:$0xff]  ;;  %v735_v3 = vld [vmem:[%s4117_s11 + $0x5b0] sm:$0xff] }
 0x7b0   : > { %3484 = vmatpush3.msra.mxu0 %v626_v25  ;;  %3519 = vmatpush3.msra.mxu1 %v658_v26  ;;  %v2329_v11 = vadd.f32 %v2328_v63, %v1932_v62  ;;  %v2400_v53 = vadd.f32 %v2399_v5, %v1940_v0  ;;  %v744_v25 = vld [vmem:[%s4117_s11 + $0x5f8] sm:$0xff]  ;;  %v737_v62 = vld [vmem:[%s4117_s11 + $0x5c0] sm:$0xff]  ;;  %v687_v5 = vld [vmem:[%s4117_s11 + $0x430] sm:$0xff] }
 0x7b1   : > { %3485 = vmatprep.subr.mxu0 %v641_v27  ;;  %3520 = vmatprep.subr.mxu1 %v673_v28  ;;  %v696_v26 = vld [vmem:[%s4117_s11 + $0x478] sm:$0xff] }
 0x7b2   : > { %3486 = vmatpush3.msra.mxu0 %v625_v29  ;;  %3521 = vmatpush3.msra.mxu1 %v657_v30  ;;  %v2553_v27 = vmax.f32 %v2329_v11, 0.0  ;;  %v728_v28 = vld [vmem:[%s4117_s11 + $0x578] sm:$0xff]  ;;  %v2555_v29 = vmax.f32 %v2400_v53, 0.0  ;;  %v711_v30 = vld [vmem:[%s4117_s11 + $0x4f0] sm:$0xff]  ;;  %v718_v11 = vld [vmem:[%s4117_s11 + $0x528] sm:$0xff] }
 0x7b3   : > { %3487 = vmatprep.subr.mxu0 %v640_v31  ;;  %3522 = vmatprep.subr.mxu1 %v672_v32  ;;  %v743_v31 = vld [vmem:[%s4117_s11 + $0x5f0] sm:$0xff]  ;;  %v704_v63 = vld [vmem:[%s4117_s11 + $0x4b8] sm:$0xff]  ;;  %v685_v53 = vld [vmem:[%s4117_s11 + $0x420] sm:$0xff] }
 0x7b4   : > { %3488 = vmatpush3.msra.mxu0 %v624_v33  ;;  %3523 = vmatpush3.msra.mxu1 %v656_v34  ;;  %v695_v32 = vld [vmem:[%s4117_s11 + $0x470] sm:$0xff]  ;;  %v710_v34 = vld [vmem:[%s4117_s11 + $0x4e8] sm:$0xff]  ;;  %v736_v0 = vld [vmem:[%s4117_s11 + $0x5b8] sm:$0xff] }
 0x7b5   : > { %3489 = vmatprep.subr.mxu0 %v639_v35  ;;  %3524 = vmatprep.subr.mxu1 %v671_v36  ;;  %v727_v33 = vld [vmem:[%s4117_s11 + $0x570] sm:$0xff]  ;;  %v742_v35 = vld [vmem:[%s4117_s11 + $0x5e8] sm:$0xff] }
 0x7b6   : > { %3490 = vmatpush3.msra.mxu0 %v623_v41  ;;  %3525 = vmatpush3.msra.mxu1 %v655_v42  ;;  %v694_v36 = vld [vmem:[%s4117_s11 + $0x468] sm:$0xff]  ;;  %v709_v42 = vld [vmem:[%s4117_s11 + $0x4e0] sm:$0xff] }
 0x7b7   : > { %3491 = vmatprep.subr.mxu0 %v638_v43  ;;  %3526 = vmatprep.subr.mxu1 %v670_v44  ;;  %v726_v41 = vld [vmem:[%s4117_s11 + $0x568] sm:$0xff]  ;;  %v741_v43 = vld [vmem:[%s4117_s11 + $0x5e0] sm:$0xff] }
 0x7b8   : > { %3492 = vmatpush3.msra.mxu0 %v622_v45  ;;  %3527 = vmatpush3.msra.mxu1 %v654_v46  ;;  %v693_v44 = vld [vmem:[%s4117_s11 + $0x460] sm:$0xff]  ;;  %v708_v46 = vld [vmem:[%s4117_s11 + $0x4d8] sm:$0xff] }
 0x7b9   : > { %3493 = vmatprep.subr.mxu0 %v637_v47  ;;  %3528 = vmatprep.subr.mxu1 %v669_v48  ;;  %v725_v45 = vld [vmem:[%s4117_s11 + $0x560] sm:$0xff]  ;;  %v740_v47 = vld [vmem:[%s4117_s11 + $0x5d8] sm:$0xff] }
 0x7ba   : > { %3494 = vmatpush3.msra.mxu0 %v621_v49  ;;  %3529 = vmatpush3.msra.mxu1 %v653_v50  ;;  %v692_v48 = vld [vmem:[%s4117_s11 + $0x458] sm:$0xff]  ;;  %v707_v50 = vld [vmem:[%s4117_s11 + $0x4d0] sm:$0xff] }
 0x7bb   : > { %3495 = vmatprep.subr.mxu0 %v636_v52  ;;  %3530 = vmatprep.subr.mxu1 %v668_v55  ;;  %v724_v49 = vld [vmem:[%s4117_s11 + $0x558] sm:$0xff]  ;;  %v739_v52 = vld [vmem:[%s4117_s11 + $0x5d0] sm:$0xff] }
 0x7bc   : > { %3496 = vmatpush3.msra.mxu0 %v620_v59  ;;  %3531 = vmatpush3.msra.mxu1 %v652_v8  ;;  %v691_v55 = vld [vmem:[%s4117_s11 + $0x450] sm:$0xff]  ;;  %v738_v59 = vld [vmem:[%s4117_s11 + $0x5c8] sm:$0xff] }
 0x7bd   : > { %3497 = vmatprep.subr.mxu0 %v635_v60  ;;  %3532 = vmatprep.subr.mxu1 %v667_v61  ;;  %v690_v8 = vld [vmem:[%s4117_s11 + $0x448] sm:$0xff]  ;;  %v705_v61 = vld [vmem:[%s4117_s11 + $0x4c0] sm:$0xff] }
 0x7be   : > { %3498 = vmatpush3.msra.mxu0 %v619_v20  ;;  %3533 = vmatpush3.msra.mxu1 %v651_v22  ;;  %v722_v60 = vld [vmem:[%s4117_s11 + $0x548] sm:$0xff]  ;;  %v689_v20 = vld [vmem:[%s4117_s11 + $0x440] sm:$0xff] }
 0x7bf   : > { %3499 = vmatprep.subr.mxu0 %v634_v1  ;;  %3534 = vmatprep.subr.mxu1 %v666_v2  ;;  %v721_v22 = vld [vmem:[%s4117_s11 + $0x540] sm:$0xff]  ;;  %v688_v1 = vld [vmem:[%s4117_s11 + $0x438] sm:$0xff] }
 0x7c0   : > { %3500 = vmatpush3.msra.mxu0 %v618_v6  ;;  %3535 = vmatpush3.msra.mxu1 %v650_v7  ;;  %v720_v2 = vld [vmem:[%s4117_s11 + $0x538] sm:$0xff]  ;;  %v719_v6 = vld [vmem:[%s4117_s11 + $0x530] sm:$0xff]  ;;  %v702_v7 = vld [vmem:[%s4117_s11 + $0x4a8] sm:$0xff] }
 0x7c1   : > { %3501 = vmatprep.subr.mxu0 %v633_v9  ;;  %3536 = vmatprep.subr.mxu1 %v665_v10  ;;  %v734_v9 = vld [vmem:[%s4117_s11 + $0x5a8] sm:$0xff] }
 0x7c2   : > { %3502 = vmatpush3.msra.mxu0 %v617_v12  ;;  %3537 = vmatpush3.msra.mxu1 %v649_v13  ;;  %v686_v10 = vld [vmem:[%s4117_s11 + $0x428] sm:$0xff]  ;;  %v701_v12 = vld [vmem:[%s4117_s11 + $0x4a0] sm:$0xff] }
 0x7c3   : > { %2769 = vmatmul.mubr.f32.vlgmr.msra.gmra.mxu0 %v2548_v54  ;;  %2839 = vmatmul.mubr.f32.vlgmr.msra.gmra.mxu1 %v2550_v14  ;;  %v733_v13 = vld [vmem:[%s4117_s11 + $0x5a0] sm:$0xff]  ;;  %v4585_v14 = vpop.f32.mrf.mxu0 }
 0x7c4   : > { %3541 = vmatprep.subr.mxu0 %v712_v15  ;;  %3576 = vmatprep.subr.mxu1 %v744_v25  ;;  %v717_v54 = vld [vmem:[%s4117_s11 + $0x520] sm:$0xff]  ;;  %v700_v15 = vld [vmem:[%s4117_s11 + $0x498] sm:$0xff] }
 0x7c5   : > { %3542 = vmatpush3.msra.mxu0 %v696_v26  ;;  %2908 = vmatprep.mubr.f32.mxu0 %v2553_v27  ;;  %v732_v25 = vld [vmem:[%s4117_s11 + $0x598] sm:$0xff]  ;;  %v1928_v26 = vrot.slane %v4423_v4, %v4242_v39  ;;  %v1936_v27 = vrot.slane %v4423_v4, %v4277_v17  ;;  %v683_v39 = vld [vmem:[%s4117_s11 + $0x410] sm:$0xff] }
 0x7c6   : > { %3577 = vmatpush3.msra.mxu1 %v728_v28  ;;  %2978 = vmatprep.mubr.f32.mxu1 %v2555_v29  ;;  %v4593_v28 = vpop.f32.mrf.mxu1  ;;  %v684_v29 = vld [vmem:[%s4117_s11 + $0x418] sm:$0xff]  ;;  %v715_v17 = vld [vmem:[%s4117_s11 + $0x510] sm:$0xff] }
 0x7c7   : > { %3543 = vmatprep.subr.mxu0 %v711_v30  ;;  %3578 = vmatprep.subr.mxu1 %v743_v31  ;;  %v716_v30 = vld [vmem:[%s4117_s11 + $0x518] sm:$0xff]  ;;  %v699_v31 = vld [vmem:[%s4117_s11 + $0x490] sm:$0xff] }
 0x7c8   : > { %3544 = vmatpush3.msra.mxu0 %v695_v32  ;;  %3579 = vmatpush3.msra.mxu1 %v727_v33  ;;  %v731_v32 = vld [vmem:[%s4117_s11 + $0x590] sm:$0xff]  ;;  %v1948_v33 = vrot.slane %v4423_v4, %v4448_v38 }
 0x7c9   : > { %3545 = vmatprep.subr.mxu0 %v710_v34  ;;  %3580 = vmatprep.subr.mxu1 %v742_v35  ;;  %v2470_v34 = vpop.f32.mrf.mxu0  ;;  %v1956_v35 = vrot.slane %v4423_v4, %v1923_v40  ;;  %v729_v40 = vld [vmem:[%s4117_s11 + $0x580] sm:$0xff] }
 0x7ca   : > { %3546 = vmatpush3.msra.mxu0 %v694_v36  ;;  %3581 = vmatpush3.msra.mxu1 %v726_v41  ;;  %v698_v36 = vld [vmem:[%s4117_s11 + $0x488] sm:$0xff] }
 0x7cb   : > { %3547 = vmatprep.subr.mxu0 %v709_v42  ;;  %3582 = vmatprep.subr.mxu1 %v741_v43  ;;  %v730_v41 = vld [vmem:[%s4117_s11 + $0x588] sm:$0xff]  ;;  %v2327_v42 = vadd.f32 %v4506_v51, %v1928_v26  ;;  %v2398_v43 = vadd.f32 %v4515_v58, %v1936_v27  ;;  %v769_v27 = vld [vmem:[%s4117_s11 + $0x6c0] sm:$0xff] }
 0x7cc   : > { %3548 = vmatpush3.msra.mxu0 %v693_v44  ;;  %3583 = vmatpush3.msra.mxu1 %v725_v45  ;;  %v2541_v44 = vpop.f32.mrf.mxu1  ;;  %v682_v45 = vld [vmem:[%s4117_s11 + $0x408] sm:$0xff] }
 0x7cd   : > { %3549 = vmatprep.subr.mxu0 %v708_v46  ;;  %3584 = vmatprep.subr.mxu1 %v740_v47  ;;  %v714_v46 = vld [vmem:[%s4117_s11 + $0x508] sm:$0xff]  ;;  %v2471_v47 = vadd.f32 %v2470_v34, %v1948_v33  ;;  %v2542_v51 = vadd.f32 %v2541_v44, %v1956_v35  ;;  %v2552_v58 = vmax.f32 %v2327_v42, 0.0  ;;  %v800_v33 = vld [vmem:[%s4117_s11 + $0x7b8] sm:$0xff]  ;;  %v767_v34 = vld [vmem:[%s4117_s11 + $0x6b0] sm:$0xff] }
 0x7ce   : > { %3550 = vmatpush3.msra.mxu0 %v692_v48  ;;  %3585 = vmatpush3.msra.mxu1 %v724_v49  ;;  %v681_v48 = vld [vmem:[%s4117_s11 + $0x400] sm:$0xff]  ;;  %v786_v26 = vld [vmem:[%s4117_s11 + $0x748] sm:$0xff]  ;;  %v799_v35 = vld [vmem:[%s4117_s11 + $0x7b0] sm:$0xff] }
 0x7cf   : > { %3551 = vmatprep.subr.mxu0 %v707_v50  ;;  %3586 = vmatprep.subr.mxu1 %v739_v52  ;;  %v713_v49 = vld [vmem:[%s4117_s11 + $0x500] sm:$0xff]  ;;  %v2554_v50 = vmax.f32 %v2398_v43, 0.0  ;;  %v776_v52 = vld [vmem:[%s4117_s11 + $0x6f8] sm:$0xff]  ;;  %v766_v42 = vld [vmem:[%s4117_s11 + $0x6a8] sm:$0xff] }
 0x7d0   : > { %3552 = vmatpush3.msra.mxu0 %v691_v55  ;;  %3587 = vmatpush3.msra.mxu1 %v723_v56  ;;  %v808_v55 = vld [vmem:[%s4117_s11 + $0x7f8] sm:$0xff]  ;;  %v798_v43 = vld [vmem:[%s4117_s11 + $0x7a8] sm:$0xff] }
 0x7d1   : > { %3553 = vmatprep.subr.mxu0 %v706_v57  ;;  %3588 = vmatprep.subr.mxu1 %v738_v59  ;;  %v760_v56 = vld [vmem:[%s4117_s11 + $0x678] sm:$0xff]  ;;  %v2557_v57 = vmax.f32 %v2471_v47, 0.0  ;;  %v750_v44 = vld [vmem:[%s4117_s11 + $0x628] sm:$0xff]  ;;  %v781_v47 = vld [vmem:[%s4117_s11 + $0x720] sm:$0xff] }
 0x7d2   : > { %3554 = vmatpush3.msra.mxu0 %v690_v8  ;;  %3589 = vmatpush3.msra.mxu1 %v722_v60  ;;  %v792_v59 = vld [vmem:[%s4117_s11 + $0x778] sm:$0xff]  ;;  %v2559_v8 = vmax.f32 %v2542_v51, 0.0  ;;  %v775_v60 = vld [vmem:[%s4117_s11 + $0x6f0] sm:$0xff] }
 0x7d3   : > { %3555 = vmatprep.subr.mxu0 %v705_v61  ;;  %3590 = vmatprep.subr.mxu1 %v737_v62  ;;  %v807_v61 = vld [vmem:[%s4117_s11 + $0x7f0] sm:$0xff]  ;;  %v748_v51 = vld [vmem:[%s4117_s11 + $0x618] sm:$0xff] }
 0x7d4   : > { %3556 = vmatpush3.msra.mxu0 %v689_v20  ;;  %3591 = vmatpush3.msra.mxu1 %v721_v22  ;;  %v759_v62 = vld [vmem:[%s4117_s11 + $0x670] sm:$0xff]  ;;  %v774_v22 = vld [vmem:[%s4117_s11 + $0x6e8] sm:$0xff] }
 0x7d5   : > { %3557 = vmatprep.subr.mxu0 %v704_v63  ;;  %3592 = vmatprep.subr.mxu1 %v736_v0  ;;  %v791_v20 = vld [vmem:[%s4117_s11 + $0x770] sm:$0xff]  ;;  %v806_v63 = vld [vmem:[%s4117_s11 + $0x7e8] sm:$0xff] }
 0x7d6   : > { %3558 = vmatpush3.msra.mxu0 %v688_v1  ;;  %3593 = vmatpush3.msra.mxu1 %v720_v2  ;;  %v758_v0 = vld [vmem:[%s4117_s11 + $0x668] sm:$0xff]  ;;  %v773_v2 = vld [vmem:[%s4117_s11 + $0x6e0] sm:$0xff] }
 0x7d7   : > { %3559 = vmatprep.subr.mxu0 %v703_v16  ;;  %3594 = vmatprep.subr.mxu1 %v735_v3  ;;  %v790_v1 = vld [vmem:[%s4117_s11 + $0x768] sm:$0xff]  ;;  %v805_v16 = vld [vmem:[%s4117_s11 + $0x7e0] sm:$0xff] }
 0x7d8   : > { %3560 = vmatpush3.msra.mxu0 %v687_v5  ;;  %3595 = vmatpush3.msra.mxu1 %v719_v6  ;;  %v757_v3 = vld [vmem:[%s4117_s11 + $0x660] sm:$0xff]  ;;  %v772_v6 = vld [vmem:[%s4117_s11 + $0x6d8] sm:$0xff] }
 0x7d9   : > { %3561 = vmatprep.subr.mxu0 %v702_v7  ;;  %3596 = vmatprep.subr.mxu1 %v734_v9  ;;  %v789_v5 = vld [vmem:[%s4117_s11 + $0x760] sm:$0xff]  ;;  %v804_v7 = vld [vmem:[%s4117_s11 + $0x7d8] sm:$0xff] }
 0x7da   : > { %3562 = vmatpush3.msra.mxu0 %v686_v10  ;;  %3597 = vmatpush3.msra.mxu1 %v718_v11  ;;  %v756_v9 = vld [vmem:[%s4117_s11 + $0x658] sm:$0xff]  ;;  %v771_v11 = vld [vmem:[%s4117_s11 + $0x6d0] sm:$0xff] }
 0x7db   : > { %3563 = vmatprep.subr.mxu0 %v701_v12  ;;  %3598 = vmatprep.subr.mxu1 %v733_v13  ;;  %v788_v10 = vld [vmem:[%s4117_s11 + $0x758] sm:$0xff]  ;;  %v803_v12 = vld [vmem:[%s4117_s11 + $0x7d0] sm:$0xff] }
 0x7dc   : > { %3564 = vmatpush3.msra.mxu0 %v685_v53  ;;  %3599 = vmatpush3.msra.mxu1 %v717_v54  ;;  %v755_v13 = vld [vmem:[%s4117_s11 + $0x650] sm:$0xff]  ;;  %v770_v54 = vld [vmem:[%s4117_s11 + $0x6c8] sm:$0xff] }
 0x7dd   : > { %3565 = vmatprep.subr.mxu0 %v700_v15  ;;  %3600 = vmatprep.subr.mxu1 %v732_v25  ;;  %v787_v53 = vld [vmem:[%s4117_s11 + $0x750] sm:$0xff]  ;;  %v802_v15 = vld [vmem:[%s4117_s11 + $0x7c8] sm:$0xff] }
 0x7de   : > { %3566 = vmatpush3.msra.mxu0 %v684_v29  ;;  %3601 = vmatpush3.msra.mxu1 %v716_v30  ;;  %v754_v25 = vld [vmem:[%s4117_s11 + $0x648] sm:$0xff]  ;;  %v801_v29 = vld [vmem:[%s4117_s11 + $0x7c0] sm:$0xff] }
 0x7df   : > { %3567 = vmatprep.subr.mxu0 %v699_v31  ;;  %3602 = vmatprep.subr.mxu1 %v731_v32  ;;  %v753_v30 = vld [vmem:[%s4117_s11 + $0x640] sm:$0xff]  ;;  %v768_v32 = vld [vmem:[%s4117_s11 + $0x6b8] sm:$0xff] }
 0x7e0   : > { %3568 = vmatpush3.msra.mxu0 %v683_v39  ;;  %3603 = vmatpush3.msra.mxu1 %v715_v17  ;;  %v785_v31 = vld [vmem:[%s4117_s11 + $0x740] sm:$0xff]  ;;  %v752_v39 = vld [vmem:[%s4117_s11 + $0x638] sm:$0xff] }
 0x7e1   : > { %3569 = vmatprep.subr.mxu0 %v698_v36  ;;  %3604 = vmatprep.subr.mxu1 %v730_v41  ;;  %v784_v17 = vld [vmem:[%s4117_s11 + $0x738] sm:$0xff]  ;;  %v751_v36 = vld [vmem:[%s4117_s11 + $0x630] sm:$0xff] }
 0x7e2   : > { %3570 = vmatpush3.msra.mxu0 %v682_v45  ;;  %3605 = vmatpush3.msra.mxu1 %v714_v46  ;;  %v783_v41 = vld [vmem:[%s4117_s11 + $0x730] sm:$0xff]  ;;  %v782_v45 = vld [vmem:[%s4117_s11 + $0x728] sm:$0xff]  ;;  %v765_v46 = vld [vmem:[%s4117_s11 + $0x6a0] sm:$0xff] }
 0x7e3   : > { %3571 = vmatprep.subr.mxu0 %v697_v37  ;;  %3606 = vmatprep.subr.mxu1 %v729_v40  ;;  %v797_v37 = vld [vmem:[%s4117_s11 + $0x7a0] sm:$0xff] }
 0x7e4   : > { %3572 = vmatpush3.msra.mxu0 %v681_v48  ;;  %3607 = vmatpush3.msra.mxu1 %v713_v49  ;;  %v749_v40 = vld [vmem:[%s4117_s11 + $0x620] sm:$0xff]  ;;  %v764_v48 = vld [vmem:[%s4117_s11 + $0x698] sm:$0xff] }
 0x7e5   : > { %2909 = vmatmul.mubr.f32.vlgmr.msra.gmra.mxu0 %v2552_v58  ;;  %2979 = vmatmul.mubr.f32.vlgmr.msra.gmra.mxu1 %v2554_v50  ;;  %v796_v49 = vld [vmem:[%s4117_s11 + $0x798] sm:$0xff]  ;;  %v763_v50 = vld [vmem:[%s4117_s11 + $0x690] sm:$0xff] }
 0x7e6   : > { %3611 = vmatprep.subr.mxu0 %v776_v52  ;;  %3646 = vmatprep.subr.mxu1 %v808_v55  ;;  %v780_v58 = vld [vmem:[%s4117_s11 + $0x718] sm:$0xff]  ;;  %v795_v52 = vld [vmem:[%s4117_s11 + $0x790] sm:$0xff] }
 0x7e7   : > { %3612 = vmatpush3.msra.mxu0 %v760_v56  ;;  %3048 = vmatprep.mubr.f32.mxu0 %v2557_v57  ;;  %v747_v55 = vld [vmem:[%s4117_s11 + $0x610] sm:$0xff]  ;;  %v762_v57 = vld [vmem:[%s4117_s11 + $0x688] sm:$0xff] }
 0x7e8   : > { %3647 = vmatpush3.msra.mxu1 %v792_v59  ;;  %3118 = vmatprep.mubr.f32.mxu1 %v2559_v8  ;;  %v779_v56 = vld [vmem:[%s4117_s11 + $0x710] sm:$0xff]  ;;  %v794_v59 = vld [vmem:[%s4117_s11 + $0x788] sm:$0xff]  ;;  %v2469_v8 = vadd.f32 %v4585_v14, %v1944_v19 }
 0x7e9   : > { %3613 = vmatprep.subr.mxu0 %v775_v60  ;;  %3648 = vmatprep.subr.mxu1 %v807_v61  ;;  %v2540_v60 = vadd.f32 %v4593_v28, %v4431_v21  ;;  %v746_v61 = vld [vmem:[%s4117_s11 + $0x608] sm:$0xff] }
 0x7ea   : > { %3614 = vmatpush3.msra.mxu0 %v759_v62  ;;  %3649 = vmatpush3.msra.mxu1 %v791_v20  ;;  %v778_v62 = vld [vmem:[%s4117_s11 + $0x708] sm:$0xff]  ;;  %v761_v20 = vld [vmem:[%s4117_s11 + $0x680] sm:$0xff]  ;;  %v2556_v4 = vmax.f32 %v2469_v8, 0.0 }
 0x7eb   : > { %3615 = vmatprep.subr.mxu0 %v774_v22  ;;  %3650 = vmatprep.subr.mxu1 %v806_v63  ;;  %v793_v22 = vld [vmem:[%s4117_s11 + $0x780] sm:$0xff]  ;;  %v2558_v19 = vmax.f32 %v2540_v60, 0.0 }
 0x7ec   : > { %3616 = vmatpush3.msra.mxu0 %v758_v0  ;;  %3651 = vmatpush3.msra.mxu1 %v790_v1  ;;  %v745_v63 = vld [vmem:[%s4117_s11 + $0x600] sm:$0xff] }
 0x7ed   : > { %3617 = vmatprep.subr.mxu0 %v773_v2  ;;  %3652 = vmatprep.subr.mxu1 %v805_v16  ;;  %v777_v0 = vld [vmem:[%s4117_s11 + $0x700] sm:$0xff] }
 0x7ee   : > { %3618 = vmatpush3.msra.mxu0 %v757_v3  ;;  %3653 = vmatpush3.msra.mxu1 %v789_v5  ;;  %v3850_v2 = vld [vmem:[%s4123_s2] sm:$0xff] }
 0x7ef   : > { %3619 = vmatprep.subr.mxu0 %v772_v6  ;;  %3654 = vmatprep.subr.mxu1 %v804_v7  ;;  %v2563_v16 = vrot.slane %v3850_v2, %v4437_v24 }
 0x7f0   : > { %3620 = vmatpush3.msra.mxu0 %v756_v9  ;;  %3655 = vmatpush3.msra.mxu1 %v788_v10 }
 0x7f1   : > { %3621 = vmatprep.subr.mxu0 %v771_v11  ;;  %3656 = vmatprep.subr.mxu1 %v803_v12 }
 0x7f2   : > { %3622 = vmatpush3.msra.mxu0 %v755_v13  ;;  %3657 = vmatpush3.msra.mxu1 %v787_v53 }
 0x7f3   : > { %3623 = vmatprep.subr.mxu0 %v770_v54  ;;  %3658 = vmatprep.subr.mxu1 %v802_v15 }
 0x7f4   : > { %3624 = vmatpush3.msra.mxu0 %v754_v25  ;;  %3659 = vmatpush3.msra.mxu1 %v786_v26 }
 0x7f5   : > { %3625 = vmatprep.subr.mxu0 %v769_v27  ;;  %3660 = vmatprep.subr.mxu1 %v801_v29 }
 0x7f6   : > { %3626 = vmatpush3.msra.mxu0 %v753_v30  ;;  %3661 = vmatpush3.msra.mxu1 %v785_v31 }
 0x7f7   : > { %3627 = vmatprep.subr.mxu0 %v768_v32  ;;  %3662 = vmatprep.subr.mxu1 %v800_v33 }
 0x7f8   : > { %3628 = vmatpush3.msra.mxu0 %v752_v39  ;;  %3663 = vmatpush3.msra.mxu1 %v784_v17 }
 0x7f9   : > { %3629 = vmatprep.subr.mxu0 %v767_v34  ;;  %3664 = vmatprep.subr.mxu1 %v799_v35 }
 0x7fa   : > { %3630 = vmatpush3.msra.mxu0 %v751_v36  ;;  %3665 = vmatpush3.msra.mxu1 %v783_v41 }
 0x7fb   : > { %3631 = vmatprep.subr.mxu0 %v766_v42  ;;  %3666 = vmatprep.subr.mxu1 %v798_v43 }
 0x7fc   : > { %3632 = vmatpush3.msra.mxu0 %v750_v44  ;;  %3667 = vmatpush3.msra.mxu1 %v782_v45 }
 0x7fd   : > { %3633 = vmatprep.subr.mxu0 %v765_v46  ;;  %3668 = vmatprep.subr.mxu1 %v797_v37 }
 0x7fe   : > { %3634 = vmatpush3.msra.mxu0 %v749_v40  ;;  %3669 = vmatpush3.msra.mxu1 %v781_v47 }
 0x7ff   : > { %3635 = vmatprep.subr.mxu0 %v764_v48  ;;  %3670 = vmatprep.subr.mxu1 %v796_v49 }
 0x800   : > { %3636 = vmatpush3.msra.mxu0 %v748_v51  ;;  %3671 = vmatpush3.msra.mxu1 %v780_v58  ;;  %v3141_v58 = vrot.slane %v3850_v2, %v4420_v18 }
 0x801   : > { %3637 = vmatprep.subr.mxu0 %v763_v50  ;;  %3672 = vmatprep.subr.mxu1 %v795_v52  ;;  %v3146_v52 = vrot.slane %v3850_v2, %v4448_v38 }
 0x802   : > { %3638 = vmatpush3.msra.mxu0 %v747_v55  ;;  %3673 = vmatpush3.msra.mxu1 %v779_v56 }
 0x803   : > { %3639 = vmatprep.subr.mxu0 %v762_v57  ;;  %3674 = vmatprep.subr.mxu1 %v794_v59 }
 0x804   : > { %3640 = vmatpush3.msra.mxu0 %v746_v61  ;;  %3675 = vmatpush3.msra.mxu1 %v778_v62 }
 0x805   : > { %3641 = vmatprep.subr.mxu0 %v761_v20  ;;  %3676 = vmatprep.subr.mxu1 %v793_v22 }
 0x806   : > { %3642 = vmatpush3.msra.mxu0 %v745_v63  ;;  %3677 = vmatpush3.msra.mxu1 %v777_v0 }
 0x807   : > { %3049 = vmatmul.mubr.f32.vlgmr.msra.gmra.mxu0 %v2556_v4  ;;  %3119 = vmatmul.mubr.f32.vlgmr.msra.gmra.mxu1 %v2558_v19 }
 0x862   : > { %v3433_v21 = vpop.f32.mrf.mxu0  ;;  %v3468_v28 = vpop.f32.mrf.mxu1 }
 0x864   : > { %v3434_v14 = vpop.f32.mrf.mxu0  ;;  %v3469_v5 = vpop.f32.mrf.mxu1 }
 0x865   : > { %v3435_v3 = vadd.f32 %v3434_v14, %v3433_v21  ;;  %v3470_v11 = vadd.f32 %v3469_v5, %v3468_v28 }
 0x867   : > { %v2631_v7 = vadd.f32 %v3435_v3, %v2563_v16 }
 0x869   : > { %v2701_v13 = vadd.f32 %v3470_v11, %v2631_v7 }
 0x883   : > { %v3503_v1 = vpop.f32.mrf.mxu0  ;;  %v3538_v9 = vpop.f32.mrf.mxu1 }
 0x885   : > { %v3504_v6 = vpop.f32.mrf.mxu0  ;;  %v3539_v53 = vpop.f32.mrf.mxu1 }
 0x886   : > { %v3505_v12 = vadd.f32 %v3504_v6, %v3503_v1  ;;  %v3540_v26 = vadd.f32 %v3539_v53, %v3538_v9 }
 0x888   : > { %v2771_v15 = vadd.f32 %v3505_v12, %v2701_v13 }
 0x88a   : > { %v2841_v29 = vadd.f32 %v3540_v26, %v2771_v15 }
 0x8a5   : > { %v3573_v10 = vpop.f32.mrf.mxu0  ;;  %v3608_v25 = vpop.f32.mrf.mxu1 }
 0x8a7   : > { %v3574_v54 = vpop.f32.mrf.mxu0  ;;  %v3609_v30 = vpop.f32.mrf.mxu1 }
 0x8a8   : > { %v3575_v27 = vadd.f32 %v3574_v54, %v3573_v10  ;;  %v3610_v33 = vadd.f32 %v3609_v30, %v3608_v25 }
 0x8aa   : > { %v2911_v31 = vadd.f32 %v3575_v27, %v2841_v29 }
 0x8ac   : > { %v2981_v34 = vadd.f32 %v3610_v33, %v2911_v31 }
 0x8c7   : > { %v3643_v32 = vpop.f32.mrf.mxu0  ;;  %v3678_v24 = vpop.f32.mrf.mxu1 }
 0x8c9   : > { %v3644_v39 = vpop.f32.mrf.mxu0  ;;  %v3679_v17 = vpop.f32.mrf.mxu1 }
 0x8ca   : > { %v3645_v35 = vadd.f32 %v3644_v39, %v3643_v32  ;;  %v3680_v41 = vadd.f32 %v3679_v17, %v3678_v24 }
 0x8cc   : > { %v3051_v36 = vadd.f32 %v3645_v35, %v2981_v34 }
 0x8ce   : > { %v3121_v42 = vadd.f32 %v3680_v41, %v3051_v36 }
 0x8d0   : > { %v3124_v43 = vadd.f32 %v3121_v42, %v4283_v23 }
 0x8d2   : > { %v3125_v44 = vsel %vm816_vm2, %v3124_v43, 0.0 }
 0x8d3   : > { %3126 = vadd.xlane.f32.xlu0 %v3125_v44 }
 0x95c   : > { %v3127_v45 = vpop.xlane.xlu0 %3126 }
 0x95d   : > { %v3128_v46 = vmul.f32 0.03125, %v3127_v45 }
 0x95f   : > { %v3129_v37 = vsub.f32 %v3124_v43, %v3128_v46 }
 0x961   : > { %v3130_v40 = vmul.f32 %v3129_v37, %v3129_v37 }
 0x963   : > { %v3131_v47 = vsel %vm816_vm2, %v3130_v40, 0.0 }
 0x964   : > { %3132 = vadd.xlane.f32.xlu1 %v3131_v47 }
 0x9ed   : > { %v3133_v48 = vpop.xlane.xlu1 %3132 }
 0x9ee   : > { %v3134_v49 = vmul.f32 0.03125, %v3133_v48 }
 0x9f0   : > { %v3135_v51 = vadd.f32 1e-05, %v3134_v49 }
 0x9f2   : > { %3848 = vrsqrt.f32 %v3135_v51 }
 0x9ff   : > { %v3849_v50 = vpop.eup %3848 }
 0xa00   : > { %v3137_v23 = vmul.f32 %v3849_v50, %v3129_v37 }
 0xa02   : > { %v3142_v55 = vmul.f32 %v3141_v58, %v3137_v23  ;;  %3152 = sbr.rel (%p3363_p1) target bundleno = 2568 (0xa08), region = 64 }
 0xa04   : > { %v3147_v56 = vadd.f32 %v3146_v52, %v3142_v55 }
 0xa06   : > { %3148 = vst.msk [vmem:[#allocation2] sm:$0xff] %vm816_vm2, %v3147_v56 }
 0xa07   : > { %3153 = vst.msk [vmem:[%s432_s9] sm:$0xff] %vm816_vm2, %v3147_v56 }
 0xa08 PF: > { %s3365_s11 = sshll.u32 %s3931_s13, 7  ;;  %s4787_s26 = sld [smem:[#allocation18_spill]] }
 0xa09   : > { %s3168_s30 = sshll.u32 %s432_s9, 4  ;;  %s4788_s20 = sand.u32 1, %s3919_s10   ;;  %s3169_s30 = int_to_ptr.vmem [resolvable:$true] %s3168_s30 }
 0xa0a   : > { %s3155_s12 = scalar_lea.sflag [#allocation4], %s4788_s20  ;;  %s3851_s22 = scalar_lea.vmem %s3169_s30, 128 }
 0xa0b   : > { %p3852_p2 = scmp.ne.s32.totalorder %s3169_s30, %s3851_s22  ;;  %s3952_s21 = smov [#allocation3]  }
 0xa0c   : > { %s3855_s28 = sshll.u32 %s3952_s21, 4  ;;  %s3856_s28 = int_to_ptr.vmem [resolvable:$false] %s3855_s28 }
 0xa0d   : > { %p3853_p4 = pnand %p3852_p2, %p4052_p3  ;;  %s3857_s0 = scalar_lea.vmem %s3856_s28, 256 }
 0xa0e   : > { %s3166_s25 = scalar_lea.hbm %s4787_s26, %s3365_s11  ;;  %p3858_p6 = scmp.lt.s32.totalorder %s3169_s30, %s3856_s28 }
 0xa0f   : > { %p3854_p5 = pneg %p3853_p4  ;;  %p3859_p7 = scmp.lt.s32.totalorder %s3857_s0, %s3851_s22 }
 0xa11   : > { %p3860_p8 = por %p3859_p7, %p3858_p6 }
 0xa13   : > { %p3861_p10 = pnand %p3860_p8, %p3854_p5 }
 0xa15   : > { %3864 = shalt.err (!%p3861_p10)
}
 0xa16   : > { %s3865_s13 = scalar_lea.hbm %s3166_s25, 128  ;;  %s3869_s24 = scalar_lea.hbm %s4787_s26, 256 }
 0xa17   : > { %p3866_p11 = scmp.ne.s32.totalorder %s3166_s25, %s3865_s13  ;;  %p3870_p0 = scmp.lt.s32.totalorder %s3166_s25, %s4787_s26 }
 0xa18   : > { %p3871_p1 = scmp.lt.s32.totalorder %s3869_s24, %s3865_s13 }
 0xa19   : > { %p3867_p12 = pnand %p3866_p11, %p4052_p3 }
 0xa1a   : > { %p3872_p2 = por %p3871_p1, %p3870_p0 }
 0xa1b   : > { %p3868_p13 = pneg %p3867_p12 }
 0xa1d   : > { %p3873_p4 = pnand %p3872_p2, %p3868_p13 }
 0xa1f   : > { %3876 = shalt.err (!%p3873_p4)
}
 0xa20   : > { %3752 = dma.vmem_to_hbm [thread:$0]  (%p4052_p3), %s3169_s30, 128, %s3166_s25, %s3155_s12  }
 0xa21 PF: > { %s4789_s23 = sld [smem:[#allocation10_spill]] }
 0xa22   : > { %s4790_s19 = sld [smem:[#allocation6_spill]] }
 0xa27   : > { %p3758_p5 = scmp.ge.s32.totalorder %s4789_s23, 2 }
 0xa28   : > { %s3180_s29 = sand.u32 1, %s4790_s19  }
 0xa29   : > { %p3755_p6 = pnand %p3758_p5, %p4062_p9  ;;  %s3181_s11 = scalar_lea.sflag [#allocation4], %s3180_s29 }
 0xa2b   : > { %p3756_p7 = pneg %p3755_p6 }
 0xa2d   : > { %3910 = dma.done.wait (%p3756_p7), %s3181_s11, 128  }
 0xa2e   : > { %3912 = vsyncadd (%p3756_p7), %s3181_s11, 4294967168  ;;  %s22_s16 = sadd.s32 1, %s4789_s23   ;;  %s4792_s17 = sld [smem:[#allocation7_spill]] }
 0xa2f   : > { %p19_p8 = scmp.ge.s32.totalorder %s22_s16, 6   ;;  %s4793_s11 = sld [smem:[#allocation15_spill]] }
 0xa30   : > { %s4794_s12 = sld [smem:[#allocation8_spill]]  ;;  %s4798_s30 = smov %s3919_s10 }
 0xa31   : > { %s4795_s13 = sld [smem:[#allocation9_spill]]  ;;  %21 = sbr.rel (!%p19_p8) target bundleno = 9 (0x9), region = 120 }
 0xa32   : > { %s4796_s14 = sld [smem:[#allocation11_spill]] }
 0xa33   : > { %s4797_s15 = sld [smem:[#allocation13_spill]] }
 0xa34   : > { %s4799_s10 = smov %s4792_s17 }
 0xa36   :  { %3186 = vsyncpa [#allocation4], 1 }
 0xa37   :  { %3188 = vsyncpa [#allocation4 + $0x1], 1 }

</bundles_post_ra>
